<compile_context>
chip_gen: v5e
topology: v5e:2x2
jax: 0.10.0
libtpu: 0.0.40
codegen_flags: <defaults>
</compile_context>

<pallas_src>
import functools

import jax
import jax.numpy as jnp
from jax.experimental import pallas as pl
from jax.experimental.pallas import tpu as pltpu


# ----------------------------------------------------------------------------
# Fused Pallas kernel
# ----------------------------------------------------------------------------
def _fused_kernel(x_ref, seq_ref, sc_ref, W_ref, V_ref, o_ref, xg_ref,
                  *, B, T, H, D, offs):
    f32 = jnp.float32
    IN = x_ref.shape[1]          # Hin * Win
    E = seq_ref.shape[1]         # embedding size
    oc, o11, o12, oih, ohh, o2 = offs   # static row offsets into the W slab

    # --- trellis branch: conv(+folded BN)+ReLU as ONE dense matmul -----------
    conv = jnp.dot(x_ref[...], W_ref[oc:oc + IN, :D],
                   preferred_element_type=f32)                         # (B, D)
    conv = jnp.maximum(conv + V_ref[0:1, :D], 0.0)
    # fc11 (rows pre-permuted to position-major flatten order) + ReLU
    x1 = jnp.maximum(jnp.dot(conv, W_ref[o11:o11 + D, :3 * H],
                             preferred_element_type=f32)
                     + V_ref[1:2, :3 * H], 0.0)                        # (B, 3H)
    # fc12 + ReLU
    x1 = jnp.maximum(jnp.dot(x1, W_ref[o12:o12 + 3 * H, :H],
                             preferred_element_type=f32)
                     + V_ref[2:3, :H], 0.0)                            # (B, H)

    # --- LSTM branch: hoisted input projection + staged gates + recurrence ---
    xproj = (jnp.dot(seq_ref[...], W_ref[oih:oih + E, :4 * H],
                     preferred_element_type=f32)
             + V_ref[3:4, :4 * H])                                     # (T*B, 4H)
    for t in range(T):                       # stage off the critical path
        xg_ref[t] = xproj[t * B:(t + 1) * B, :]

    whh = W_ref[ohh:ohh + H, :4 * H]         # loaded once, reused every step
    h = jnp.zeros((B, H), f32)
    c = jnp.zeros((B, H), f32)
    for t in range(T):                       # T static -> fully unrolled
        gates = xg_ref[t] + jnp.dot(h, whh, preferred_element_type=f32)
        sig = jax.nn.sigmoid(gates)          # full-vreg EUP op; cols = [i,f,o,g]
        tnh = jnp.tanh(gates)
        c = sig[:, H:2 * H] * c + sig[:, :H] * tnh[:, 3 * H:]
        h = sig[:, 2 * H:3 * H] * jnp.tanh(c)
    x2 = jnp.maximum(jnp.dot(h, W_ref[o2:o2 + H, :H],
                             preferred_element_type=f32)
                     + V_ref[4:5, :H], 0.0)                            # (B, H)

    # --- conf / budget branches: K=1 outer products on the VPU ---------------
    x3 = jnp.maximum(sc_ref[:, 0:1] * V_ref[5:6, :H] + V_ref[6:7, :H], 0.0)
    x4 = jnp.maximum(sc_ref[:, 1:2] * V_ref[7:8, :H] + V_ref[8:9, :H], 0.0)

    # --- fuse + head (N=1): multiply + lane reduction -------------------------
    s = x1 + x2 + x3 + x4
    o_ref[...] = (jnp.sum(s * V_ref[9:10, :H], axis=1, keepdims=True)
                  + V_ref[10:11, 0:1])


# ----------------------------------------------------------------------------
# One-time parameter preparation: BN folding, conv->dense matrix, fc11 row
# permutation, LSTM gate permutation, and packing into 2 contiguous slabs.
# ----------------------------------------------------------------------------
def prepare_fused_params(params):
    f32 = jnp.float32
    Fn, _, KH, KW = params["conv_w"].shape
    H = params["rnn_hidden"]
    stride = params["stride"]
    lin_in = params["fc11_w"].shape[0]
    convh = lin_in // Fn                     # conv output width == 1 by module construction
    Hin = (convh - 1) * stride + KH
    Win = KW
    D = convh * Fn

    # Fold eval-mode BatchNorm into the conv weights/bias.
    # TODO(synk): training-mode BatchNorm (batch statistics) is not modeled.
    scale = params["bn_gamma"] / jnp.sqrt(params["bn_var"] + 1e-5)
    w_eff = params["conv_w"][:, 0] * scale[:, None, None]              # (Fn,KH,KW)
    b_eff = (params["conv_b"] - params["bn_mean"]) * scale + params["bn_beta"]

    # Lower conv+flatten to ONE dense (Hin*Win, convh*Fn) matrix so the kernel
    # does a single matmul from the raw flattened image (stride handled here).
    wblk = jnp.transpose(w_eff, (1, 2, 0)).reshape(KH * KW, Fn)
    Wc = jnp.zeros((Hin * Win, D), f32)
    for p in range(convh):
        r0 = p * stride
        Wc = Wc.at[r0 * Win:(r0 + KH) * Win, p * Fn:(p + 1) * Fn].set(wblk)
    cb_cols = jnp.tile(b_eff, (convh,))                                # (D,) pos-major

    # fc11 rows: PyTorch filter-major flatten (f*convh+p) -> position-major (p*Fn+f)
    w11p = (params["fc11_w"].reshape(Fn, convh, 3 * H)
            .transpose(1, 0, 2).reshape(D, 3 * H))

    def permute_gates(w):   # last axis 4H : [i,f,g,o] -> [i,f,o,g]
        return jnp.concatenate(
            [w[..., :2 * H], w[..., 3 * H:], w[..., 2 * H:3 * H]], axis=-1)

    # ---- pack all matmul weights into ONE 2-D slab, 8-row-aligned segments ---
    mats = [Wc, w11p, params["fc12_w"], permute_gates(params["lstm_wih"]),
            permute_gates(params["lstm_whh"]), params["fc2_w"]]
    max_cols = max(int(m.shape[1]) for m in mats)
    width = 128 * (-(-max_cols // 128))
    segs, offs, r = [], [], 0
    for m in mats:
        rows = int(m.shape[0])
        prows = -(-rows // 8) * 8
        seg = jnp.zeros((prows, width), f32).at[:rows, :m.shape[1]].set(
            m.astype(f32))
        segs.append(seg)
        offs.append(r)
        r += prows
    W = jnp.concatenate(segs, axis=0)

    # ---- pack every bias / 1-row weight into ONE small vector slab ----------
    vecs = [cb_cols, params["fc11_b"], params["fc12_b"],
            permute_gates(params["lstm_b"]), params["fc2_b"],
            params["fc3_w"][0], params["fc3_b"],
            params["fc4_w"][0], params["fc4_b"],
            params["fc_w"][:, 0], params["fc_b"]]
    nv = -(-len(vecs) // 8) * 8
    V = jnp.zeros((nv, width), f32)
    for i, v in enumerate(vecs):
        V = V.at[i, :v.shape[0]].set(v.astype(f32))

    return {"W": W, "V": V, "offs": tuple(offs),
            "rnn_hidden": H, "conv_out": D, "in_h": Hin, "in_w": Win}


# ----------------------------------------------------------------------------
# Forward pass: tiny input re-layouts (glue) + one fused pallas_call
# ----------------------------------------------------------------------------
def trellis_budget_forward(prep, trellis_x, seq_x, conf_x, budget):
    B = trellis_x.shape[0]
    T, E = seq_x.shape[1], seq_x.shape[2]
    H, D = prep["rnn_hidden"], prep["conv_out"]
    Hin, Win = prep["in_h"], prep["in_w"]
    # The module builds the conv with kernel width == para_w (output width 1);
    # guard against a mismatching input instead of silently computing garbage.
    assert trellis_x.shape[2] == Hin and trellis_x.shape[3] == Win, \
        "trellis input shape must match the conv geometry baked at prepare time"

    x_flat = trellis_x.reshape(B, Hin * Win)                        # (B, Hin*Win)
    seq2d = jnp.transpose(seq_x, (1, 0, 2)).reshape(T * B, E)       # time-major rows
    sc = jnp.concatenate([conf_x, budget], axis=1)                  # (B, 2)

    kernel = functools.partial(_fused_kernel, B=B, T=T, H=H, D=D,
                               offs=prep["offs"])
    vspec = pl.BlockSpec(memory_space=pltpu.MemorySpace.VMEM)
    args = (x_flat, seq2d, sc, prep["W"], prep["V"])
    return pl.pallas_call(
        kernel,
        out_shape=jax.ShapeDtypeStruct((B, 1), jnp.float32),
        in_specs=[vspec] * len(args),
        out_specs=vspec,
        scratch_shapes=[pltpu.VMEM((T, B, 4 * H), jnp.float32)],
    )(*args)


# ----------------------------------------------------------------------------
# Pure-JAX reference (correctness check)
# ----------------------------------------------------------------------------
def reference_forward(params, trellis_x, seq_x, conf_x, budget):
    hi = jax.lax.Precision.HIGHEST
    stride = params["stride"]
    conv = jax.lax.conv_general_dilated(
        trellis_x, params["conv_w"], window_strides=(stride, stride),
        padding="VALID", dimension_numbers=("NCHW", "OIHW", "NCHW"), precision=hi)
    conv = conv + params["conv_b"][None, :, None, None]
    scale = params["bn_gamma"] / jnp.sqrt(params["bn_var"] + 1e-5)
    conv = ((conv - params["bn_mean"][None, :, None, None])
            * scale[None, :, None, None] + params["bn_beta"][None, :, None, None])
    x1 = jax.nn.relu(conv).reshape(conv.shape[0], -1)
    x1 = jax.nn.relu(jnp.dot(x1, params["fc11_w"], precision=hi) + params["fc11_b"])
    x1 = jax.nn.relu(jnp.dot(x1, params["fc12_w"], precision=hi) + params["fc12_b"])

    H = params["rnn_hidden"]
    B = seq_x.shape[0]

    def step(carry, x_t):
        h, c = carry
        gates = (jnp.dot(x_t, params["lstm_wih"], precision=hi)
                 + jnp.dot(h, params["lstm_whh"], precision=hi) + params["lstm_b"])
        i = jax.nn.sigmoid(gates[:, :H])
        f = jax.nn.sigmoid(gates[:, H:2 * H])
        g = jnp.tanh(gates[:, 2 * H:3 * H])
        o = jax.nn.sigmoid(gates[:, 3 * H:4 * H])
        c = f * c + i * g
        h = o * jnp.tanh(c)
        return (h, c), None

    (h, _), _ = jax.lax.scan(step, (jnp.zeros((B, H)), jnp.zeros((B, H))),
                             jnp.transpose(seq_x, (1, 0, 2)))
    x2 = jax.nn.relu(jnp.dot(h, params["fc2_w"], precision=hi) + params["fc2_b"])
    x3 = jax.nn.relu(jnp.dot(conf_x, params["fc3_w"], precision=hi) + params["fc3_b"])
    x4 = jax.nn.relu(jnp.dot(budget, params["fc4_w"], precision=hi) + params["fc4_b"])
    x = x1 + x2 + x3 + x4
    return jnp.dot(x, params["fc_w"], precision=hi) + params["fc_b"]


# ----------------------------------------------------------------------------
# Deterministic parameter init + run
# ----------------------------------------------------------------------------
def make_params(key, *, para_h, para_w, n_filters, filter_size, stride,
                rnn_hidden, embed_size):
    convh = (para_h - filter_size) // stride + 1
    convw = (para_w - (para_w - 1) - 1) // stride + 1   # == 1
    lin_in = convw * convh * n_filters
    ks = jax.random.split(key, 22)

    def init(k, shape, s=0.1):
        return (s * jax.random.normal(k, shape)).astype(jnp.float32)

    return {
        "stride": stride,
        "rnn_hidden": rnn_hidden,
        "conv_w": init(ks[0], (n_filters, 1, filter_size, para_w)),
        "conv_b": init(ks[1], (n_filters,)),
        "bn_gamma": 1.0 + init(ks[2], (n_filters,), 0.05),
        "bn_beta": init(ks[3], (n_filters,), 0.05),
        "bn_mean": init(ks[4], (n_filters,), 0.05),
        "bn_var": 1.0 + jnp.abs(init(ks[5], (n_filters,), 0.05)),
        "fc11_w": init(ks[6], (lin_in, 3 * rnn_hidden)),
        "fc11_b": init(ks[7], (3 * rnn_hidden,)),
        "fc12_w": init(ks[8], (3 * rnn_hidden, rnn_hidden)),
        "fc12_b": init(ks[9], (rnn_hidden,)),
        "fc2_w": init(ks[10], (rnn_hidden, rnn_hidden)),
        "fc2_b": init(ks[11], (rnn_hidden,)),
        "fc3_w": init(ks[12], (1, rnn_hidden)),
        "fc3_b": init(ks[13], (rnn_hidden,)),
        "fc4_w": init(ks[14], (1, rnn_hidden)),
        "fc4_b": init(ks[15], (rnn_hidden,)),
        # LSTM weights stored matmul-ready: (E,4H), (H,4H), combined bias (4H,)
        "lstm_wih": init(ks[16], (embed_size, 4 * rnn_hidden)),
        "lstm_whh": init(ks[17], (rnn_hidden, 4 * rnn_hidden)),
        "lstm_b": init(ks[18], (4 * rnn_hidden,)),
        "fc_w": init(ks[19], (rnn_hidden, 1)),
        "fc_b": init(ks[20], (1,)),
    }


if __name__ == "__main__":
    B, para_h, para_w = 2, 16, 16
    n_filters, filter_size, stride = 4, 3, 1
    rnn_hidden, embed_size, T = 32, 8, 8

    key = jax.random.PRNGKey(0)
    kp, k1, k2, k3, k4 = jax.random.split(key, 5)
    params = make_params(kp, para_h=para_h, para_w=para_w, n_filters=n_filters,
                         filter_size=filter_size, stride=stride,
                         rnn_hidden=rnn_hidden, embed_size=embed_size)
    prep = prepare_fused_params(params)   # one-time weight re-layout / packing

    trellis_x = jax.random.normal(k1, (B, 1, para_h, para_w), jnp.float32)
    seq_x = jax.random.normal(k2, (B, T, embed_size), jnp.float32)
    conf_x = jax.random.uniform(k3, (B, 1), jnp.float32)
    budget = jax.random.uniform(k4, (B, 1), jnp.float32)

    out = trellis_budget_forward(prep, trellis_x, seq_x, conf_x, budget)
    out = jax.block_until_ready(out)

    ref = reference_forward(params, trellis_x, seq_x, conf_x, budget)
    assert out.shape == (B, 1), out.shape
    assert jnp.allclose(out, ref, atol=2e-3, rtol=2e-3), (out, ref)
    print("KERNEL_OK")
</pallas_src>

<mosaic_0001>
module attributes {stable_mosaic.version = 11 : i64} {
  func.func @_fused_kernel(%arg0: memref<2x256xf32, #tpu.memory_space<vmem>>, %arg1: memref<16x8xf32, #tpu.memory_space<vmem>>, %arg2: memref<2x2xf32, #tpu.memory_space<vmem>>, %arg3: memref<480x128xf32, #tpu.memory_space<vmem>>, %arg4: memref<16x128xf32, #tpu.memory_space<vmem>>, %arg5: memref<2x1xf32, #tpu.memory_space<vmem>>, %arg6: memref<8x2x128xf32, #tpu.memory_space<vmem>>) attributes {dimension_semantics = [], scalar_prefetch = 0 : i64, scratch_operands = 1 : i64, tpu.core_type = #tpu.core_type<tc>} {
    %c0 = arith.constant 0 : index
    %c0_0 = arith.constant 0 : index
    %0 = vector.load %arg0[%c0, %c0_0] : memref<2x256xf32, #tpu.memory_space<vmem>>, vector<2x256xf32>
    %c0_1 = arith.constant 0 : index
    %c0_2 = arith.constant 0 : index
    %1 = vector.load %arg3[%c0_1, %c0_2] : memref<480x128xf32, #tpu.memory_space<vmem>>, vector<256x56xf32>
    %cst = arith.constant dense<0.000000e+00> : vector<2x56xf32>
    %2 = tpu.matmul %0, %1, %cst {dimension_numbers = #tpu.dot_dimension_numbers<[1], [0], [0], [1], [0, 0, 1, 1], [], []>} : vector<2x256xf32>, vector<256x56xf32>, vector<2x56xf32> -> vector<2x56xf32>
    %c0_3 = arith.constant 0 : index
    %c0_4 = arith.constant 0 : index
    %3 = vector.load %arg4[%c0_3, %c0_4] : memref<16x128xf32, #tpu.memory_space<vmem>>, vector<1x56xf32>
    %4 = vector.broadcast %3 : vector<1x56xf32> to vector<2x56xf32>
    %5 = arith.addf %2, %4 : vector<2x56xf32>
    %cst_5 = arith.constant 0.000000e+00 : f32
    %6 = vector.broadcast %cst_5 : f32 to vector<2x56xf32>
    %7 = arith.maximumf %5, %6 : vector<2x56xf32>
    %c256 = arith.constant 256 : index
    %c0_6 = arith.constant 0 : index
    %8 = vector.load %arg3[%c256, %c0_6] : memref<480x128xf32, #tpu.memory_space<vmem>>, vector<56x96xf32>
    %cst_7 = arith.constant dense<0.000000e+00> : vector<2x96xf32>
    %9 = tpu.matmul %7, %8, %cst_7 {dimension_numbers = #tpu.dot_dimension_numbers<[1], [0], [0], [1], [0, 0, 1, 1], [], []>} : vector<2x56xf32>, vector<56x96xf32>, vector<2x96xf32> -> vector<2x96xf32>
    %c1 = arith.constant 1 : index
    %c0_8 = arith.constant 0 : index
    %10 = vector.load %arg4[%c1, %c0_8] : memref<16x128xf32, #tpu.memory_space<vmem>>, vector<1x96xf32>
    %11 = vector.broadcast %10 : vector<1x96xf32> to vector<2x96xf32>
    %12 = arith.addf %9, %11 : vector<2x96xf32>
    %cst_9 = arith.constant 0.000000e+00 : f32
    %13 = vector.broadcast %cst_9 : f32 to vector<2x96xf32>
    %14 = arith.maximumf %12, %13 : vector<2x96xf32>
    %c312 = arith.constant 312 : index
    %c0_10 = arith.constant 0 : index
    %15 = vector.load %arg3[%c312, %c0_10] : memref<480x128xf32, #tpu.memory_space<vmem>>, vector<96x32xf32>
    %cst_11 = arith.constant dense<0.000000e+00> : vector<2x32xf32>
    %16 = tpu.matmul %14, %15, %cst_11 {dimension_numbers = #tpu.dot_dimension_numbers<[1], [0], [0], [1], [0, 0, 1, 1], [], []>} : vector<2x96xf32>, vector<96x32xf32>, vector<2x32xf32> -> vector<2x32xf32>
    %c2 = arith.constant 2 : index
    %c0_12 = arith.constant 0 : index
    %17 = vector.load %arg4[%c2, %c0_12] : memref<16x128xf32, #tpu.memory_space<vmem>>, vector<1x32xf32>
    %18 = vector.broadcast %17 : vector<1x32xf32> to vector<2x32xf32>
    %19 = arith.addf %16, %18 : vector<2x32xf32>
    %cst_13 = arith.constant 0.000000e+00 : f32
    %20 = vector.broadcast %cst_13 : f32 to vector<2x32xf32>
    %21 = arith.maximumf %19, %20 : vector<2x32xf32>
    %c0_14 = arith.constant 0 : index
    %c0_15 = arith.constant 0 : index
    %22 = vector.load %arg1[%c0_14, %c0_15] : memref<16x8xf32, #tpu.memory_space<vmem>>, vector<16x8xf32>
    %c408 = arith.constant 408 : index
    %c0_16 = arith.constant 0 : index
    %23 = vector.load %arg3[%c408, %c0_16] : memref<480x128xf32, #tpu.memory_space<vmem>>, vector<8x128xf32>
    %cst_17 = arith.constant dense<0.000000e+00> : vector<16x128xf32>
    %24 = tpu.matmul %22, %23, %cst_17 {dimension_numbers = #tpu.dot_dimension_numbers<[1], [0], [0], [1], [0, 0, 1, 1], [], []>} : vector<16x8xf32>, vector<8x128xf32>, vector<16x128xf32> -> vector<16x128xf32>
    %c3 = arith.constant 3 : index
    %c0_18 = arith.constant 0 : index
    %25 = vector.load %arg4[%c3, %c0_18] : memref<16x128xf32, #tpu.memory_space<vmem>>, vector<1x128xf32>
    %26 = vector.broadcast %25 : vector<1x128xf32> to vector<16x128xf32>
    %27 = arith.addf %24, %26 : vector<16x128xf32>
    %28 = vector.extract_strided_slice %27 {offsets = [0, 0], sizes = [2, 128], strides = [1, 1]} : vector<16x128xf32> to vector<2x128xf32>
    %c0_19 = arith.constant 0 : index
    %c0_20 = arith.constant 0 : index
    %c0_21 = arith.constant 0 : index
    %29 = vector.load %arg6[%c0_19, %c0_20, %c0_21] : memref<8x2x128xf32, #tpu.memory_space<vmem>>, vector<1x2x128xf32>
    %30 = vector.shape_cast %29 : vector<1x2x128xf32> to vector<2x128xf32>
    %31 = vector.shape_cast %28 : vector<2x128xf32> to vector<1x2x128xf32>
    tpu.vector_store %arg6[%c0_19, %c0_20, %c0_21], %31 {strides = array<i32>} : memref<8x2x128xf32, #tpu.memory_space<vmem>>, vector<1x2x128xf32>,
    %32 = vector.extract_strided_slice %27 {offsets = [2, 0], sizes = [2, 128], strides = [1, 1]} : vector<16x128xf32> to vector<2x128xf32>
    %c1_22 = arith.constant 1 : index
    %c0_23 = arith.constant 0 : index
    %c0_24 = arith.constant 0 : index
    %33 = vector.load %arg6[%c1_22, %c0_23, %c0_24] : memref<8x2x128xf32, #tpu.memory_space<vmem>>, vector<1x2x128xf32>
    %34 = vector.shape_cast %33 : vector<1x2x128xf32> to vector<2x128xf32>
    %35 = vector.shape_cast %32 : vector<2x128xf32> to vector<1x2x128xf32>
    tpu.vector_store %arg6[%c1_22, %c0_23, %c0_24], %35 {strides = array<i32>} : memref<8x2x128xf32, #tpu.memory_space<vmem>>, vector<1x2x128xf32>,
    %36 = vector.extract_strided_slice %27 {offsets = [4, 0], sizes = [2, 128], strides = [1, 1]} : vector<16x128xf32> to vector<2x128xf32>
    %c2_25 = arith.constant 2 : index
    %c0_26 = arith.constant 0 : index
    %c0_27 = arith.constant 0 : index
    %37 = vector.load %arg6[%c2_25, %c0_26, %c0_27] : memref<8x2x128xf32, #tpu.memory_space<vmem>>, vector<1x2x128xf32>
    %38 = vector.shape_cast %37 : vector<1x2x128xf32> to vector<2x128xf32>
    %39 = vector.shape_cast %36 : vector<2x128xf32> to vector<1x2x128xf32>
    tpu.vector_store %arg6[%c2_25, %c0_26, %c0_27], %39 {strides = array<i32>} : memref<8x2x128xf32, #tpu.memory_space<vmem>>, vector<1x2x128xf32>,
    %40 = vector.extract_strided_slice %27 {offsets = [6, 0], sizes = [2, 128], strides = [1, 1]} : vector<16x128xf32> to vector<2x128xf32>
    %c3_28 = arith.constant 3 : index
    %c0_29 = arith.constant 0 : index
    %c0_30 = arith.constant 0 : index
    %41 = vector.load %arg6[%c3_28, %c0_29, %c0_30] : memref<8x2x128xf32, #tpu.memory_space<vmem>>, vector<1x2x128xf32>
    %42 = vector.shape_cast %41 : vector<1x2x128xf32> to vector<2x128xf32>
    %43 = vector.shape_cast %40 : vector<2x128xf32> to vector<1x2x128xf32>
    tpu.vector_store %arg6[%c3_28, %c0_29, %c0_30], %43 {strides = array<i32>} : memref<8x2x128xf32, #tpu.memory_space<vmem>>, vector<1x2x128xf32>,
    %44 = vector.extract_strided_slice %27 {offsets = [8, 0], sizes = [2, 128], strides = [1, 1]} : vector<16x128xf32> to vector<2x128xf32>
    %c4 = arith.constant 4 : index
    %c0_31 = arith.constant 0 : index
    %c0_32 = arith.constant 0 : index
    %45 = vector.load %arg6[%c4, %c0_31, %c0_32] : memref<8x2x128xf32, #tpu.memory_space<vmem>>, vector<1x2x128xf32>
    %46 = vector.shape_cast %45 : vector<1x2x128xf32> to vector<2x128xf32>
    %47 = vector.shape_cast %44 : vector<2x128xf32> to vector<1x2x128xf32>
    tpu.vector_store %arg6[%c4, %c0_31, %c0_32], %47 {strides = array<i32>} : memref<8x2x128xf32, #tpu.memory_space<vmem>>, vector<1x2x128xf32>,
    %48 = vector.extract_strided_slice %27 {offsets = [10, 0], sizes = [2, 128], strides = [1, 1]} : vector<16x128xf32> to vector<2x128xf32>
    %c5 = arith.constant 5 : index
    %c0_33 = arith.constant 0 : index
    %c0_34 = arith.constant 0 : index
    %49 = vector.load %arg6[%c5, %c0_33, %c0_34] : memref<8x2x128xf32, #tpu.memory_space<vmem>>, vector<1x2x128xf32>
    %50 = vector.shape_cast %49 : vector<1x2x128xf32> to vector<2x128xf32>
    %51 = vector.shape_cast %48 : vector<2x128xf32> to vector<1x2x128xf32>
    tpu.vector_store %arg6[%c5, %c0_33, %c0_34], %51 {strides = array<i32>} : memref<8x2x128xf32, #tpu.memory_space<vmem>>, vector<1x2x128xf32>,
    %52 = vector.extract_strided_slice %27 {offsets = [12, 0], sizes = [2, 128], strides = [1, 1]} : vector<16x128xf32> to vector<2x128xf32>
    %c6 = arith.constant 6 : index
    %c0_35 = arith.constant 0 : index
    %c0_36 = arith.constant 0 : index
    %53 = vector.load %arg6[%c6, %c0_35, %c0_36] : memref<8x2x128xf32, #tpu.memory_space<vmem>>, vector<1x2x128xf32>
    %54 = vector.shape_cast %53 : vector<1x2x128xf32> to vector<2x128xf32>
    %55 = vector.shape_cast %52 : vector<2x128xf32> to vector<1x2x128xf32>
    tpu.vector_store %arg6[%c6, %c0_35, %c0_36], %55 {strides = array<i32>} : memref<8x2x128xf32, #tpu.memory_space<vmem>>, vector<1x2x128xf32>,
    %56 = vector.extract_strided_slice %27 {offsets = [14, 0], sizes = [2, 128], strides = [1, 1]} : vector<16x128xf32> to vector<2x128xf32>
    %c7 = arith.constant 7 : index
    %c0_37 = arith.constant 0 : index
    %c0_38 = arith.constant 0 : index
    %57 = vector.load %arg6[%c7, %c0_37, %c0_38] : memref<8x2x128xf32, #tpu.memory_space<vmem>>, vector<1x2x128xf32>
    %58 = vector.shape_cast %57 : vector<1x2x128xf32> to vector<2x128xf32>
    %59 = vector.shape_cast %56 : vector<2x128xf32> to vector<1x2x128xf32>
    tpu.vector_store %arg6[%c7, %c0_37, %c0_38], %59 {strides = array<i32>} : memref<8x2x128xf32, #tpu.memory_space<vmem>>, vector<1x2x128xf32>,
    %c416 = arith.constant 416 : index
    %c0_39 = arith.constant 0 : index
    %60 = vector.load %arg3[%c416, %c0_39] : memref<480x128xf32, #tpu.memory_space<vmem>>, vector<32x128xf32>
    %cst_40 = arith.constant 0.000000e+00 : f32
    %61 = vector.broadcast %cst_40 : f32 to vector<2x32xf32>
    %cst_41 = arith.constant 0.000000e+00 : f32
    %62 = vector.broadcast %cst_41 : f32 to vector<2x32xf32>
    %c0_42 = arith.constant 0 : index
    %c0_43 = arith.constant 0 : index
    %c0_44 = arith.constant 0 : index
    %63 = vector.load %arg6[%c0_42, %c0_43, %c0_44] : memref<8x2x128xf32, #tpu.memory_space<vmem>>, vector<1x2x128xf32>
    %64 = vector.shape_cast %63 : vector<1x2x128xf32> to vector<2x128xf32>
    %cst_45 = arith.constant dense<0.000000e+00> : vector<2x128xf32>
    %65 = tpu.matmul %61, %60, %cst_45 {dimension_numbers = #tpu.dot_dimension_numbers<[1], [0], [0], [1], [0, 0, 1, 1], [], []>} : vector<2x32xf32>, vector<32x128xf32>, vector<2x128xf32> -> vector<2x128xf32>
    %66 = arith.addf %64, %65 : vector<2x128xf32>
    %67 = arith.negf %66 : vector<2x128xf32>
    %68 = math.exp %67 : vector<2x128xf32>
    %cst_46 = arith.constant 1.000000e+00 : f32
    %69 = vector.broadcast %cst_46 : f32 to vector<2x128xf32>
    %70 = arith.addf %69, %68 : vector<2x128xf32>
    %71 = arith.divf %69, %70 : vector<2x128xf32>
    %72 = math.tanh %66 : vector<2x128xf32>
    %73 = vector.extract_strided_slice %71 {offsets = [0, 32], sizes = [2, 32], strides = [1, 1]} : vector<2x128xf32> to vector<2x32xf32>
    %74 = arith.mulf %73, %62 : vector<2x32xf32>
    %75 = vector.extract_strided_slice %71 {offsets = [0, 0], sizes = [2, 32], strides = [1, 1]} : vector<2x128xf32> to vector<2x32xf32>
    %76 = vector.extract_strided_slice %72 {offsets = [0, 96], sizes = [2, 32], strides = [1, 1]} : vector<2x128xf32> to vector<2x32xf32>
    %77 = arith.mulf %75, %76 : vector<2x32xf32>
    %78 = arith.addf %74, %77 : vector<2x32xf32>
    %79 = vector.extract_strided_slice %71 {offsets = [0, 64], sizes = [2, 32], strides = [1, 1]} : vector<2x128xf32> to vector<2x32xf32>
    %80 = math.tanh %78 : vector<2x32xf32>
    %81 = arith.mulf %79, %80 : vector<2x32xf32>
    %c1_47 = arith.constant 1 : index
    %c0_48 = arith.constant 0 : index
    %c0_49 = arith.constant 0 : index
    %82 = vector.load %arg6[%c1_47, %c0_48, %c0_49] : memref<8x2x128xf32, #tpu.memory_space<vmem>>, vector<1x2x128xf32>
    %83 = vector.shape_cast %82 : vector<1x2x128xf32> to vector<2x128xf32>
    %cst_50 = arith.constant dense<0.000000e+00> : vector<2x128xf32>
    %84 = tpu.matmul %81, %60, %cst_50 {dimension_numbers = #tpu.dot_dimension_numbers<[1], [0], [0], [1], [0, 0, 1, 1], [], []>} : vector<2x32xf32>, vector<32x128xf32>, vector<2x128xf32> -> vector<2x128xf32>
    %85 = arith.addf %83, %84 : vector<2x128xf32>
    %86 = arith.negf %85 : vector<2x128xf32>
    %87 = math.exp %86 : vector<2x128xf32>
    %cst_51 = arith.constant 1.000000e+00 : f32
    %88 = vector.broadcast %cst_51 : f32 to vector<2x128xf32>
    %89 = arith.addf %88, %87 : vector<2x128xf32>
    %90 = arith.divf %88, %89 : vector<2x128xf32>
    %91 = math.tanh %85 : vector<2x128xf32>
    %92 = vector.extract_strided_slice %90 {offsets = [0, 32], sizes = [2, 32], strides = [1, 1]} : vector<2x128xf32> to vector<2x32xf32>
    %93 = arith.mulf %92, %78 : vector<2x32xf32>
    %94 = vector.extract_strided_slice %90 {offsets = [0, 0], sizes = [2, 32], strides = [1, 1]} : vector<2x128xf32> to vector<2x32xf32>
    %95 = vector.extract_strided_slice %91 {offsets = [0, 96], sizes = [2, 32], strides = [1, 1]} : vector<2x128xf32> to vector<2x32xf32>
    %96 = arith.mulf %94, %95 : vector<2x32xf32>
    %97 = arith.addf %93, %96 : vector<2x32xf32>
    %98 = vector.extract_strided_slice %90 {offsets = [0, 64], sizes = [2, 32], strides = [1, 1]} : vector<2x128xf32> to vector<2x32xf32>
    %99 = math.tanh %97 : vector<2x32xf32>
    %100 = arith.mulf %98, %99 : vector<2x32xf32>
    %c2_52 = arith.constant 2 : index
    %c0_53 = arith.constant 0 : index
    %c0_54 = arith.constant 0 : index
    %101 = vector.load %arg6[%c2_52, %c0_53, %c0_54] : memref<8x2x128xf32, #tpu.memory_space<vmem>>, vector<1x2x128xf32>
    %102 = vector.shape_cast %101 : vector<1x2x128xf32> to vector<2x128xf32>
    %cst_55 = arith.constant dense<0.000000e+00> : vector<2x128xf32>
    %103 = tpu.matmul %100, %60, %cst_55 {dimension_numbers = #tpu.dot_dimension_numbers<[1], [0], [0], [1], [0, 0, 1, 1], [], []>} : vector<2x32xf32>, vector<32x128xf32>, vector<2x128xf32> -> vector<2x128xf32>
    %104 = arith.addf %102, %103 : vector<2x128xf32>
    %105 = arith.negf %104 : vector<2x128xf32>
    %106 = math.exp %105 : vector<2x128xf32>
    %cst_56 = arith.constant 1.000000e+00 : f32
    %107 = vector.broadcast %cst_56 : f32 to vector<2x128xf32>
    %108 = arith.addf %107, %106 : vector<2x128xf32>
    %109 = arith.divf %107, %108 : vector<2x128xf32>
    %110 = math.tanh %104 : vector<2x128xf32>
    %111 = vector.extract_strided_slice %109 {offsets = [0, 32], sizes = [2, 32], strides = [1, 1]} : vector<2x128xf32> to vector<2x32xf32>
    %112 = arith.mulf %111, %97 : vector<2x32xf32>
    %113 = vector.extract_strided_slice %109 {offsets = [0, 0], sizes = [2, 32], strides = [1, 1]} : vector<2x128xf32> to vector<2x32xf32>
    %114 = vector.extract_strided_slice %110 {offsets = [0, 96], sizes = [2, 32], strides = [1, 1]} : vector<2x128xf32> to vector<2x32xf32>
    %115 = arith.mulf %113, %114 : vector<2x32xf32>
    %116 = arith.addf %112, %115 : vector<2x32xf32>
    %117 = vector.extract_strided_slice %109 {offsets = [0, 64], sizes = [2, 32], strides = [1, 1]} : vector<2x128xf32> to vector<2x32xf32>
    %118 = math.tanh %116 : vector<2x32xf32>
    %119 = arith.mulf %117, %118 : vector<2x32xf32>
    %c3_57 = arith.constant 3 : index
    %c0_58 = arith.constant 0 : index
    %c0_59 = arith.constant 0 : index
    %120 = vector.load %arg6[%c3_57, %c0_58, %c0_59] : memref<8x2x128xf32, #tpu.memory_space<vmem>>, vector<1x2x128xf32>
    %121 = vector.shape_cast %120 : vector<1x2x128xf32> to vector<2x128xf32>
    %cst_60 = arith.constant dense<0.000000e+00> : vector<2x128xf32>
    %122 = tpu.matmul %119, %60, %cst_60 {dimension_numbers = #tpu.dot_dimension_numbers<[1], [0], [0], [1], [0, 0, 1, 1], [], []>} : vector<2x32xf32>, vector<32x128xf32>, vector<2x128xf32> -> vector<2x128xf32>
    %123 = arith.addf %121, %122 : vector<2x128xf32>
    %124 = arith.negf %123 : vector<2x128xf32>
    %125 = math.exp %124 : vector<2x128xf32>
    %cst_61 = arith.constant 1.000000e+00 : f32
    %126 = vector.broadcast %cst_61 : f32 to vector<2x128xf32>
    %127 = arith.addf %126, %125 : vector<2x128xf32>
    %128 = arith.divf %126, %127 : vector<2x128xf32>
    %129 = math.tanh %123 : vector<2x128xf32>
    %130 = vector.extract_strided_slice %128 {offsets = [0, 32], sizes = [2, 32], strides = [1, 1]} : vector<2x128xf32> to vector<2x32xf32>
    %131 = arith.mulf %130, %116 : vector<2x32xf32>
    %132 = vector.extract_strided_slice %128 {offsets = [0, 0], sizes = [2, 32], strides = [1, 1]} : vector<2x128xf32> to vector<2x32xf32>
    %133 = vector.extract_strided_slice %129 {offsets = [0, 96], sizes = [2, 32], strides = [1, 1]} : vector<2x128xf32> to vector<2x32xf32>
    %134 = arith.mulf %132, %133 : vector<2x32xf32>
    %135 = arith.addf %131, %134 : vector<2x32xf32>
    %136 = vector.extract_strided_slice %128 {offsets = [0, 64], sizes = [2, 32], strides = [1, 1]} : vector<2x128xf32> to vector<2x32xf32>
    %137 = math.tanh %135 : vector<2x32xf32>
    %138 = arith.mulf %136, %137 : vector<2x32xf32>
    %c4_62 = arith.constant 4 : index
    %c0_63 = arith.constant 0 : index
    %c0_64 = arith.constant 0 : index
    %139 = vector.load %arg6[%c4_62, %c0_63, %c0_64] : memref<8x2x128xf32, #tpu.memory_space<vmem>>, vector<1x2x128xf32>
    %140 = vector.shape_cast %139 : vector<1x2x128xf32> to vector<2x128xf32>
    %cst_65 = arith.constant dense<0.000000e+00> : vector<2x128xf32>
    %141 = tpu.matmul %138, %60, %cst_65 {dimension_numbers = #tpu.dot_dimension_numbers<[1], [0], [0], [1], [0, 0, 1, 1], [], []>} : vector<2x32xf32>, vector<32x128xf32>, vector<2x128xf32> -> vector<2x128xf32>
    %142 = arith.addf %140, %141 : vector<2x128xf32>
    %143 = arith.negf %142 : vector<2x128xf32>
    %144 = math.exp %143 : vector<2x128xf32>
    %cst_66 = arith.constant 1.000000e+00 : f32
    %145 = vector.broadcast %cst_66 : f32 to vector<2x128xf32>
    %146 = arith.addf %145, %144 : vector<2x128xf32>
    %147 = arith.divf %145, %146 : vector<2x128xf32>
    %148 = math.tanh %142 : vector<2x128xf32>
    %149 = vector.extract_strided_slice %147 {offsets = [0, 32], sizes = [2, 32], strides = [1, 1]} : vector<2x128xf32> to vector<2x32xf32>
    %150 = arith.mulf %149, %135 : vector<2x32xf32>
    %151 = vector.extract_strided_slice %147 {offsets = [0, 0], sizes = [2, 32], strides = [1, 1]} : vector<2x128xf32> to vector<2x32xf32>
    %152 = vector.extract_strided_slice %148 {offsets = [0, 96], sizes = [2, 32], strides = [1, 1]} : vector<2x128xf32> to vector<2x32xf32>
    %153 = arith.mulf %151, %152 : vector<2x32xf32>
    %154 = arith.addf %150, %153 : vector<2x32xf32>
    %155 = vector.extract_strided_slice %147 {offsets = [0, 64], sizes = [2, 32], strides = [1, 1]} : vector<2x128xf32> to vector<2x32xf32>
    %156 = math.tanh %154 : vector<2x32xf32>
    %157 = arith.mulf %155, %156 : vector<2x32xf32>
    %c5_67 = arith.constant 5 : index
    %c0_68 = arith.constant 0 : index
    %c0_69 = arith.constant 0 : index
    %158 = vector.load %arg6[%c5_67, %c0_68, %c0_69] : memref<8x2x128xf32, #tpu.memory_space<vmem>>, vector<1x2x128xf32>
    %159 = vector.shape_cast %158 : vector<1x2x128xf32> to vector<2x128xf32>
    %cst_70 = arith.constant dense<0.000000e+00> : vector<2x128xf32>
    %160 = tpu.matmul %157, %60, %cst_70 {dimension_numbers = #tpu.dot_dimension_numbers<[1], [0], [0], [1], [0, 0, 1, 1], [], []>} : vector<2x32xf32>, vector<32x128xf32>, vector<2x128xf32> -> vector<2x128xf32>
    %161 = arith.addf %159, %160 : vector<2x128xf32>
    %162 = arith.negf %161 : vector<2x128xf32>
    %163 = math.exp %162 : vector<2x128xf32>
    %cst_71 = arith.constant 1.000000e+00 : f32
    %164 = vector.broadcast %cst_71 : f32 to vector<2x128xf32>
    %165 = arith.addf %164, %163 : vector<2x128xf32>
    %166 = arith.divf %164, %165 : vector<2x128xf32>
    %167 = math.tanh %161 : vector<2x128xf32>
    %168 = vector.extract_strided_slice %166 {offsets = [0, 32], sizes = [2, 32], strides = [1, 1]} : vector<2x128xf32> to vector<2x32xf32>
    %169 = arith.mulf %168, %154 : vector<2x32xf32>
    %170 = vector.extract_strided_slice %166 {offsets = [0, 0], sizes = [2, 32], strides = [1, 1]} : vector<2x128xf32> to vector<2x32xf32>
    %171 = vector.extract_strided_slice %167 {offsets = [0, 96], sizes = [2, 32], strides = [1, 1]} : vector<2x128xf32> to vector<2x32xf32>
    %172 = arith.mulf %170, %171 : vector<2x32xf32>
    %173 = arith.addf %169, %172 : vector<2x32xf32>
    %174 = vector.extract_strided_slice %166 {offsets = [0, 64], sizes = [2, 32], strides = [1, 1]} : vector<2x128xf32> to vector<2x32xf32>
    %175 = math.tanh %173 : vector<2x32xf32>
    %176 = arith.mulf %174, %175 : vector<2x32xf32>
    %c6_72 = arith.constant 6 : index
    %c0_73 = arith.constant 0 : index
    %c0_74 = arith.constant 0 : index
    %177 = vector.load %arg6[%c6_72, %c0_73, %c0_74] : memref<8x2x128xf32, #tpu.memory_space<vmem>>, vector<1x2x128xf32>
    %178 = vector.shape_cast %177 : vector<1x2x128xf32> to vector<2x128xf32>
    %cst_75 = arith.constant dense<0.000000e+00> : vector<2x128xf32>
    %179 = tpu.matmul %176, %60, %cst_75 {dimension_numbers = #tpu.dot_dimension_numbers<[1], [0], [0], [1], [0, 0, 1, 1], [], []>} : vector<2x32xf32>, vector<32x128xf32>, vector<2x128xf32> -> vector<2x128xf32>
    %180 = arith.addf %178, %179 : vector<2x128xf32>
    %181 = arith.negf %180 : vector<2x128xf32>
    %182 = math.exp %181 : vector<2x128xf32>
    %cst_76 = arith.constant 1.000000e+00 : f32
    %183 = vector.broadcast %cst_76 : f32 to vector<2x128xf32>
    %184 = arith.addf %183, %182 : vector<2x128xf32>
    %185 = arith.divf %183, %184 : vector<2x128xf32>
    %186 = math.tanh %180 : vector<2x128xf32>
    %187 = vector.extract_strided_slice %185 {offsets = [0, 32], sizes = [2, 32], strides = [1, 1]} : vector<2x128xf32> to vector<2x32xf32>
    %188 = arith.mulf %187, %173 : vector<2x32xf32>
    %189 = vector.extract_strided_slice %185 {offsets = [0, 0], sizes = [2, 32], strides = [1, 1]} : vector<2x128xf32> to vector<2x32xf32>
    %190 = vector.extract_strided_slice %186 {offsets = [0, 96], sizes = [2, 32], strides = [1, 1]} : vector<2x128xf32> to vector<2x32xf32>
    %191 = arith.mulf %189, %190 : vector<2x32xf32>
    %192 = arith.addf %188, %191 : vector<2x32xf32>
    %193 = vector.extract_strided_slice %185 {offsets = [0, 64], sizes = [2, 32], strides = [1, 1]} : vector<2x128xf32> to vector<2x32xf32>
    %194 = math.tanh %192 : vector<2x32xf32>
    %195 = arith.mulf %193, %194 : vector<2x32xf32>
    %c7_77 = arith.constant 7 : index
    %c0_78 = arith.constant 0 : index
    %c0_79 = arith.constant 0 : index
    %196 = vector.load %arg6[%c7_77, %c0_78, %c0_79] : memref<8x2x128xf32, #tpu.memory_space<vmem>>, vector<1x2x128xf32>
    %197 = vector.shape_cast %196 : vector<1x2x128xf32> to vector<2x128xf32>
    %cst_80 = arith.constant dense<0.000000e+00> : vector<2x128xf32>
    %198 = tpu.matmul %195, %60, %cst_80 {dimension_numbers = #tpu.dot_dimension_numbers<[1], [0], [0], [1], [0, 0, 1, 1], [], []>} : vector<2x32xf32>, vector<32x128xf32>, vector<2x128xf32> -> vector<2x128xf32>
    %199 = arith.addf %197, %198 : vector<2x128xf32>
    %200 = arith.negf %199 : vector<2x128xf32>
    %201 = math.exp %200 : vector<2x128xf32>
    %cst_81 = arith.constant 1.000000e+00 : f32
    %202 = vector.broadcast %cst_81 : f32 to vector<2x128xf32>
    %203 = arith.addf %202, %201 : vector<2x128xf32>
    %204 = arith.divf %202, %203 : vector<2x128xf32>
    %205 = math.tanh %199 : vector<2x128xf32>
    %206 = vector.extract_strided_slice %204 {offsets = [0, 32], sizes = [2, 32], strides = [1, 1]} : vector<2x128xf32> to vector<2x32xf32>
    %207 = arith.mulf %206, %192 : vector<2x32xf32>
    %208 = vector.extract_strided_slice %204 {offsets = [0, 0], sizes = [2, 32], strides = [1, 1]} : vector<2x128xf32> to vector<2x32xf32>
    %209 = vector.extract_strided_slice %205 {offsets = [0, 96], sizes = [2, 32], strides = [1, 1]} : vector<2x128xf32> to vector<2x32xf32>
    %210 = arith.mulf %208, %209 : vector<2x32xf32>
    %211 = arith.addf %207, %210 : vector<2x32xf32>
    %212 = vector.extract_strided_slice %204 {offsets = [0, 64], sizes = [2, 32], strides = [1, 1]} : vector<2x128xf32> to vector<2x32xf32>
    %213 = math.tanh %211 : vector<2x32xf32>
    %214 = arith.mulf %212, %213 : vector<2x32xf32>
    %c448 = arith.constant 448 : index
    %c0_82 = arith.constant 0 : index
    %215 = vector.load %arg3[%c448, %c0_82] : memref<480x128xf32, #tpu.memory_space<vmem>>, vector<32x32xf32>
    %cst_83 = arith.constant dense<0.000000e+00> : vector<2x32xf32>
    %216 = tpu.matmul %214, %215, %cst_83 {dimension_numbers = #tpu.dot_dimension_numbers<[1], [0], [0], [1], [0, 0, 1, 1], [], []>} : vector<2x32xf32>, vector<32x32xf32>, vector<2x32xf32> -> vector<2x32xf32>
    %c4_84 = arith.constant 4 : index
    %c0_85 = arith.constant 0 : index
    %217 = vector.load %arg4[%c4_84, %c0_85] : memref<16x128xf32, #tpu.memory_space<vmem>>, vector<1x32xf32>
    %218 = vector.broadcast %217 : vector<1x32xf32> to vector<2x32xf32>
    %219 = arith.addf %216, %218 : vector<2x32xf32>
    %cst_86 = arith.constant 0.000000e+00 : f32
    %220 = vector.broadcast %cst_86 : f32 to vector<2x32xf32>
    %221 = arith.maximumf %219, %220 : vector<2x32xf32>
    %c0_87 = arith.constant 0 : index
    %c0_88 = arith.constant 0 : index
    %222 = vector.load %arg2[%c0_87, %c0_88] : memref<2x2xf32, #tpu.memory_space<vmem>>, vector<2x1xf32>
    %c5_89 = arith.constant 5 : index
    %c0_90 = arith.constant 0 : index
    %223 = vector.load %arg4[%c5_89, %c0_90] : memref<16x128xf32, #tpu.memory_space<vmem>>, vector<1x32xf32>
    %224 = vector.broadcast %222 : vector<2x1xf32> to vector<2x32xf32>
    %225 = vector.broadcast %223 : vector<1x32xf32> to vector<2x32xf32>
    %226 = arith.mulf %224, %225 : vector<2x32xf32>
    %c6_91 = arith.constant 6 : index
    %c0_92 = arith.constant 0 : index
    %227 = vector.load %arg4[%c6_91, %c0_92] : memref<16x128xf32, #tpu.memory_space<vmem>>, vector<1x32xf32>
    %228 = vector.broadcast %227 : vector<1x32xf32> to vector<2x32xf32>
    %229 = arith.addf %226, %228 : vector<2x32xf32>
    %cst_93 = arith.constant 0.000000e+00 : f32
    %230 = vector.broadcast %cst_93 : f32 to vector<2x32xf32>
    %231 = arith.maximumf %229, %230 : vector<2x32xf32>
    %c0_94 = arith.constant 0 : index
    %c1_95 = arith.constant 1 : index
    %232 = vector.load %arg2[%c0_94, %c1_95] : memref<2x2xf32, #tpu.memory_space<vmem>>, vector<2x1xf32>
    %c7_96 = arith.constant 7 : index
    %c0_97 = arith.constant 0 : index
    %233 = vector.load %arg4[%c7_96, %c0_97] : memref<16x128xf32, #tpu.memory_space<vmem>>, vector<1x32xf32>
    %234 = vector.broadcast %232 : vector<2x1xf32> to vector<2x32xf32>
    %235 = vector.broadcast %233 : vector<1x32xf32> to vector<2x32xf32>
    %236 = arith.mulf %234, %235 : vector<2x32xf32>
    %c8 = arith.constant 8 : index
    %c0_98 = arith.constant 0 : index
    %237 = vector.load %arg4[%c8, %c0_98] : memref<16x128xf32, #tpu.memory_space<vmem>>, vector<1x32xf32>
    %238 = vector.broadcast %237 : vector<1x32xf32> to vector<2x32xf32>
    %239 = arith.addf %236, %238 : vector<2x32xf32>
    %cst_99 = arith.constant 0.000000e+00 : f32
    %240 = vector.broadcast %cst_99 : f32 to vector<2x32xf32>
    %241 = arith.maximumf %239, %240 : vector<2x32xf32>
    %242 = arith.addf %21, %221 : vector<2x32xf32>
    %243 = arith.addf %242, %231 : vector<2x32xf32>
    %244 = arith.addf %243, %241 : vector<2x32xf32>
    %c9 = arith.constant 9 : index
    %c0_100 = arith.constant 0 : index
    %245 = vector.load %arg4[%c9, %c0_100] : memref<16x128xf32, #tpu.memory_space<vmem>>, vector<1x32xf32>
    %246 = vector.broadcast %245 : vector<1x32xf32> to vector<2x32xf32>
    %247 = arith.mulf %244, %246 : vector<2x32xf32>
    %cst_101 = arith.constant dense<0.000000e+00> : vector<2xf32>
    %248 = vector.multi_reduction <add>, %247, %cst_101 [1] : vector<2x32xf32> to vector<2xf32>
    %249 = vector.shape_cast %248 : vector<2xf32> to vector<2x1xf32>
    %c10 = arith.constant 10 : index
    %c0_102 = arith.constant 0 : index
    %250 = vector.load %arg4[%c10, %c0_102] : memref<16x128xf32, #tpu.memory_space<vmem>>, vector<1x1xf32>
    %251 = vector.broadcast %250 : vector<1x1xf32> to vector<2x1xf32>
    %252 = arith.addf %249, %251 : vector<2x1xf32>
    %c0_103 = arith.constant 0 : index
    %c0_104 = arith.constant 0 : index
    %253 = vector.load %arg5[%c0_103, %c0_104] : memref<2x1xf32, #tpu.memory_space<vmem>>, vector<2x1xf32>
    tpu.vector_store %arg5[%c0_103, %c0_104], %252 {strides = array<i32>} : memref<2x1xf32, #tpu.memory_space<vmem>>, vector<2x1xf32>,
    return
  }
}

</mosaic_0001>

<bundles_post_ra>
// kernel: tpu_custom_call.1
= control target key start
LH: loop header
LB: loop body
LE: loop exit
PB: predicated region body
PF: predicated region fallthrough
CT: control target
= control target key end

     0   :  { %10 = vsyncpa [#allocation4], 0  ;;  %s963_s21 = smov [#allocation3]   ;;  %s964_s23 = smov 128   ;;  %s1097_s0 = inlined_call_operand.vmem [shape: f32[2,256], index: 0, kind: input, shape index: {}]   ;;  %s1098_s1 = inlined_call_operand.vmem [shape: f32[16,8], index: 1, kind: input, shape index: {}]   ;;  %s1099_s2 = inlined_call_operand.vmem [shape: f32[2,2], index: 2, kind: input, shape index: {}]   ;;  %s1100_s3 = inlined_call_operand.hbm [shape: f32[480,128], index: 3, kind: input, shape index: {}]   ;;  %s1101_s4 = inlined_call_operand.vmem [shape: f32[16,128], index: 4, kind: input, shape index: {}]   ;;  %s1102_s5 = inlined_call_operand.vmem [shape: f32[2,1], index: 5, kind: output, shape index: {}]  }
   0x1   :  { %s21_s20 = sshll.u32 %s1100_s3, 4  ;;  %s23_s22 = sshll.u32 %s963_s21, 4  ;;  %s22_s20 = int_to_ptr.hbm [resolvable:$true] %s21_s20  ;;  %s24_s22 = int_to_ptr.vmem [resolvable:$true] %s23_s22 }
   0x2   :  { %s965_s24 = smov 8  }
   0x3   :  { %29 = dma.hbm_to_vmem [thread:$0]  %s22_s20, 7680, %s24_s22, [#allocation4], %s964_s23, %s964_s23, %s965_s24  }
   0x4   :  { %961 = dma.done.wait [#allocation4], 7680  }
   0x5   :  { %962 = vsyncadd [#allocation4], 4294959616  ;;  %v52_v0 = vld [vmem:[#allocation3 + $0x78] sm:$0xff]  ;;  %v51_v1 = vld [vmem:[#allocation3 + $0x70] sm:$0xff]  ;;  %vm127_vm0 = vcmask 457728   ;;  %vm196_vm1 = vcmask 64512  }
   0x6   :  { %v68_v2 = vld [vmem:[#allocation3 + $0xf8] sm:$0xff]  ;;  %77 = vmatpush.msra.mxu0 %v52_v0  ;;  %v67_v3 = vld [vmem:[#allocation3 + $0xf0] sm:$0xff]  ;;  %v50_v4 = vld [vmem:[#allocation3 + $0x68] sm:$0xff]  ;;  %vm166_vm2 = vcmask 785408   ;;  %s967_s8 = smov 32   ;;  %s968_s11 = smov 64  }
   0x7   :  { %97 = vmatpush.msra.mxu1 %v68_v2  ;;  %v66_v5 = vld [vmem:[#allocation3 + $0xe8] sm:$0xff]  ;;  %v49_v6 = vld [vmem:[#allocation3 + $0x60] sm:$0xff]  ;;  %v48_v8 = vld [vmem:[#allocation3 + $0x58] sm:$0xff]  ;;  %vm246_vm7 = vcmask 261120  }
   0x8   :  { %78 = vmatpush.msra.mxu0 %v51_v1  ;;  %v65_v7 = vld [vmem:[#allocation3 + $0xe0] sm:$0xff]  ;;  %v64_v9 = vld [vmem:[#allocation3 + $0xd8] sm:$0xff]  ;;  %v47_v10 = vld [vmem:[#allocation3 + $0x50] sm:$0xff] }
   0x9   :  { %98 = vmatpush.msra.mxu1 %v67_v3  ;;  %v63_v11 = vld [vmem:[#allocation3 + $0xd0] sm:$0xff]  ;;  %v46_v12 = vld [vmem:[#allocation3 + $0x48] sm:$0xff]  ;;  %v45_v13 = vld [vmem:[#allocation3 + $0x40] sm:$0xff] }
   0xa   :  { %79 = vmatpush.msra.mxu0 %v50_v4  ;;  %v62_v14 = vld [vmem:[#allocation3 + $0xc8] sm:$0xff]  ;;  %v61_v16 = vld [vmem:[#allocation3 + $0xc0] sm:$0xff]  ;;  %v124_v17 = vld [vmem:[#allocation3 + $0x130] sm:$0xff] }
   0xb   :  { %99 = vmatpush.msra.mxu1 %v66_v5  ;;  %v36_v15 = vld [vmem:[%s1097_s0] sm:$0xf]  ;;  %v44_v19 = vld [vmem:[#allocation3 + $0x38] sm:$0xff]  ;;  %140 = vmatpush.msra.mxu2 %v124_v17  ;;  %v122_v21 = vld [vmem:[#allocation3 + $0x120] sm:$0xff] }
   0xc   :  { %80 = vmatpush.msra.mxu0 %v49_v6  ;;  %72 = vst [vmem:[#allocation1] ss:$4 sm:$0xff] %v36_v15  ;;  %v123_v18 = vld [vmem:[#allocation3 + $0x128] sm:$0xff]  ;;  %v60_v20 = vld [vmem:[#allocation3 + $0xb8] sm:$0xff]  ;;  %v43_v22 = vld [vmem:[#allocation3 + $0x30] sm:$0xff]  ;;  %v966_v6 = vmov 0.0  }
   0xd   :  { %100 = vmatpush.msra.mxu1 %v65_v7  ;;  %141 = vmatpush.msra.mxu2 %v123_v18  ;;  %v59_v23 = vld [vmem:[#allocation3 + $0xb0] sm:$0xff]  ;;  %v42_v24 = vld [vmem:[#allocation3 + $0x28] sm:$0xff]  ;;  %v41_v26 = vld [vmem:[#allocation3 + $0x20] sm:$0xff] }
   0xe   :  { %81 = vmatpush.msra.mxu0 %v48_v8  ;;  %v58_v25 = vld [vmem:[#allocation3 + $0xa8] sm:$0xff]  ;;  %v57_v27 = vld [vmem:[#allocation3 + $0xa0] sm:$0xff]  ;;  %v40_v28 = vld [vmem:[#allocation3 + $0x18] sm:$0xff] }
   0xf   :  { %101 = vmatpush.msra.mxu1 %v64_v9  ;;  %142 = vmatpush.msra.mxu2 %v122_v21  ;;  %v56_v29 = vld [vmem:[#allocation3 + $0x98] sm:$0xff]  ;;  %v39_v30 = vld [vmem:[#allocation3 + $0x10] sm:$0xff]  ;;  %v38_v32 = vld [vmem:[#allocation3 + $0x8] sm:$0xff] }
  0x10   :  { %82 = vmatpush.msra.mxu0 %v47_v10  ;;  %v55_v31 = vld [vmem:[#allocation3 + $0x90] sm:$0xff]  ;;  %v54_v33 = vld [vmem:[#allocation3 + $0x88] sm:$0xff]  ;;  %v37_v34 = vld [vmem:[#allocation3] sm:$0xff] }
  0x11   :  { %102 = vmatpush.msra.mxu1 %v63_v11  ;;  %v53_v35 = vld [vmem:[#allocation3 + $0x80] sm:$0xff]  ;;  %v121_v38 = vld [vmem:[#allocation3 + $0x118] sm:$0xff]  ;;  %v120_v39 = vld [vmem:[#allocation3 + $0x110] sm:$0xff] }
  0x12   :  { %83 = vmatpush.msra.mxu0 %v46_v12  ;;  %143 = vmatpush.msra.mxu2 %v121_v38  ;;  %v119_v40 = vld [vmem:[#allocation3 + $0x108] sm:$0xff]  ;;  %v118_v41 = vld [vmem:[#allocation3 + $0x100] sm:$0xff]  ;;  %v163_v42 = vld [vmem:[#allocation3 + $0x190] sm:$0xff] }
  0x13   :  { %103 = vmatpush.msra.mxu1 %v62_v14  ;;  %v73_v36 = vld.sshfl [vmem:[#allocation1] sm:$0xff pattern:$0x73625140]  ;;  %v74_v37 = vld.sshfl [vmem:[#allocation1 + $0x8] sm:$0xff pattern:$0x73625140]  ;;  %174 = vmatpush.msra.mxu3 %v163_v42 }
  0x14   :  { %84 = vmatpush.msra.mxu0 %v45_v13  ;;  %144 = vmatpush.msra.mxu2 %v120_v39  ;;  %v162_v43 = vld [vmem:[#allocation3 + $0x188] sm:$0xff]  ;;  %v161_v44 = vld [vmem:[#allocation3 + $0x180] sm:$0xff]  ;;  %v193_v45 = vld [vmem:[#allocation3 + $0x198] sm:$0xff] }
  0x15   :  { %104 = vmatpush.msra.mxu1 %v61_v16  ;;  %175 = vmatpush.msra.mxu3 %v162_v43  ;;  %v160_v46 = vld [vmem:[#allocation3 + $0x178] sm:$0xff]  ;;  %v159_v47 = vld [vmem:[#allocation3 + $0x170] sm:$0xff]  ;;  %v158_v48 = vld [vmem:[#allocation3 + $0x168] sm:$0xff] }
  0x16   :  { %85 = vmatpush.msra.mxu0 %v44_v19  ;;  %145 = vmatpush.msra.mxu2 %v119_v40  ;;  %v157_v49 = vld [vmem:[#allocation3 + $0x160] sm:$0xff]  ;;  %v156_v50 = vld [vmem:[#allocation3 + $0x158] sm:$0xff]  ;;  %v155_v51 = vld [vmem:[#allocation3 + $0x150] sm:$0xff] }
  0x17   :  { %105 = vmatpush.msra.mxu1 %v60_v20  ;;  %176 = vmatpush.msra.mxu3 %v161_v44  ;;  %v862_v52 = vld [vmem:[%s1101_s4] ss:$0 sm:$0xff]  ;;  %v153_v59 = vld [vmem:[#allocation3 + $0x140] sm:$0xff]  ;;  %v152_v61 = vld [vmem:[#allocation3 + $0x138] sm:$0xff] }
  0x18   :  { %86 = vmatpush.msra.mxu0 %v43_v22  ;;  %146 = vmatpush.msra.mxu2 %v118_v41  ;;  %v154_v58 = vld [vmem:[#allocation3 + $0x148] sm:$0xff]  ;;  %v244_v62 = vld [vmem:[#allocation3 + $0x1b8] sm:$0xff]  ;;  %v243_v63 = vld [vmem:[#allocation3 + $0x1b0] sm:$0xff] }
  0x19   :  { %106 = vmatpush.msra.mxu1 %v59_v23  ;;  %177 = vmatpush.msra.mxu3 %v160_v46  ;;  %v191_v60 = vld [vmem:[%s1098_s1] sm:$0xff]  ;;  %v241_v1 = vld [vmem:[#allocation3 + $0x1a0] sm:$0xff] }
  0x1a   :  { %87 = vmatpush.msra.mxu0 %v42_v24  ;;  %218 = vmatpush.msrb.mxu2 %v193_v45  ;;  %v242_v0 = vld [vmem:[#allocation3 + $0x1a8] sm:$0xff] }
  0x1b   :  { %107 = vmatpush.msra.mxu1 %v58_v25  ;;  %178 = vmatpush.msra.mxu3 %v159_v47  ;;  %v863_v2 = vld [vmem:[%s1101_s4 + $0x1] ss:$0 sm:$0xff]  ;;  %v864_v7 = vld [vmem:[%s1101_s4 + $0x3] ss:$0 sm:$0xff] }
  0x1c   :  { %88 = vmatpush.msra.mxu0 %v41_v26 }
  0x1d   :  { %108 = vmatpush.msra.mxu1 %v57_v27  ;;  %179 = vmatpush.msra.mxu3 %v158_v48 }
  0x1e   :  { %89 = vmatpush.msra.mxu0 %v40_v28 }
  0x1f   :  { %109 = vmatpush.msra.mxu1 %v56_v29  ;;  %180 = vmatpush.msra.mxu3 %v157_v49 }
  0x20   :  { %90 = vmatpush.msra.mxu0 %v39_v30 }
  0x21   :  { %110 = vmatpush.msra.mxu1 %v55_v31  ;;  %181 = vmatpush.msra.mxu3 %v156_v50 }
  0x22   :  { %91 = vmatpush.msra.mxu0 %v38_v32 }
  0x23   :  { %111 = vmatpush.msra.mxu1 %v54_v33  ;;  %182 = vmatpush.msra.mxu3 %v155_v51 }
  0x24   :  { %92 = vmatpush.msra.mxu0 %v37_v34  ;;  %v192_v34 = vld [vmem:[%s1098_s1 + $0x8] sm:$0xff] }
  0x25   :  { %112 = vmatpush.msra.mxu1 %v53_v35  ;;  %93 = vmatmul.f32.vlgmr.msra.gmra.mxu0 %v73_v36 }
  0x26   :  { %113 = vmatmul.f32.vlgmr.msra.gmra.mxu1 %v74_v37  ;;  %183 = vmatpush.msra.mxu3 %v154_v58 }
  0x27   :  { %390 = vmatpush.msrb.mxu0 %v244_v62  ;;  %454 = vmatpush.msrb.mxu1 %v244_v62 }
  0x28   :  { %184 = vmatpush.msra.mxu3 %v153_v59 }
  0x29   :  { %391 = vmatpush.msrb.mxu0 %v243_v63  ;;  %455 = vmatpush.msrb.mxu1 %v243_v63 }
  0x2a   :  { %185 = vmatpush.msra.mxu3 %v152_v61 }
  0x2b   :  { %392 = vmatpush.msrb.mxu0 %v242_v0  ;;  %456 = vmatpush.msrb.mxu1 %v242_v0 }
  0x2c   :  { %262 = vmatpush.msrb.mxu3 %v244_v62 }
  0x2d   :  { %393 = vmatpush.msrb.mxu0 %v241_v1  ;;  %457 = vmatpush.msrb.mxu1 %v241_v1 }
  0x2e   :  { %263 = vmatpush.msrb.mxu3 %v243_v63 }
  0x2f   :  { %646 = vmatpush.msra.mxu0 %v244_v62  ;;  %710 = vmatpush.msra.mxu1 %v244_v62 }
  0x30   :  { %264 = vmatpush.msrb.mxu3 %v242_v0 }
  0x31   :  { %647 = vmatpush.msra.mxu0 %v243_v63  ;;  %711 = vmatpush.msra.mxu1 %v243_v63 }
  0x32   :  { %265 = vmatpush.msrb.mxu3 %v241_v1 }
  0x33   :  { %648 = vmatpush.msra.mxu0 %v242_v0  ;;  %712 = vmatpush.msra.mxu1 %v242_v0 }
  0x35   :  { %649 = vmatpush.msra.mxu0 %v241_v1  ;;  %713 = vmatpush.msra.mxu1 %v241_v1 }
  0xa2   :  { %v94_v53 = vpop.f32.mrf.mxu0 }
  0xa3   :  { %v114_v54 = vpop.f32.mrf.mxu1  ;;  %v95_v55 = vadd.f32 %v862_v52, %v94_v53 }
  0xa5   :  { %v115_v56 = vadd.f32 %v114_v54, %v95_v55 }
  0xa7   :  { %v117_v57 = vmax.f32 %v115_v56, 0.0 }
  0xa9   :  { %832 = vmatmul.msk.f32.vlgmr.msra.gmra.mxu2 %vm127_vm0, %v117_v57 }
  0xaa   :  { %326 = vmatpush.msra.mxu2 %v244_v62 }
  0xac   :  { %327 = vmatpush.msra.mxu2 %v243_v63 }
  0xae   :  { %328 = vmatpush.msra.mxu2 %v242_v0 }
  0xb0   :  { %329 = vmatpush.msra.mxu2 %v241_v1 }
  0xb1   :  { %834 = vmatmul.msk.f32.vlgmr.msrb.gmra.mxu2 %vm196_vm1, %v191_v60 }
  0xb2   :  { %582 = vmatpush.msrb.mxu2 %v244_v62 }
  0xb4   :  { %583 = vmatpush.msrb.mxu2 %v243_v63 }
  0xb6   :  { %584 = vmatpush.msrb.mxu2 %v242_v0 }
  0xb8   :  { %585 = vmatpush.msrb.mxu2 %v241_v1 }
  0xb9   :  { %835 = vmatmul.msk.f32.gmra.mxu2 %vm196_vm1, %v192_v34 }
 0x12c   :  { %v148_v3 = vpop.f32.mrf.mxu2 }
 0x12d   :  { %v149_v4 = vadd.f32 %v863_v2, %v148_v3 }
 0x12f   :  { %v151_v5 = vmax.f32 %v149_v4, 0.0 }
 0x131   :  { %833 = vmatmul.msk.f32.vlgmr.msra.gmra.mxu3 %vm166_vm2, %v151_v5 }
 0x132   :  { %518 = vmatpush.msra.mxu3 %v244_v62 }
 0x134   :  { %519 = vmatpush.msra.mxu3 %v243_v63  ;;  %v220_v8 = vpop.f32.mrf.mxu2 }
 0x135   :  { %v221_v9 = vadd.f32 %v864_v7, %v220_v8 }
 0x136   :  { %520 = vmatpush.msra.mxu3 %v242_v0 }
 0x137   :  { %226 = vst [vmem:[#allocation2] sm:$0xf] %v221_v9  }
 0x138   :  { %521 = vmatpush.msra.mxu3 %v241_v1  ;;  %230 = vst [vmem:[#allocation2] sm:$0xf0] %v221_v9  }
 0x139   :  { %266 = vmatmul.f32.vlgmr.msrb.gmra.mxu3 %v966_v6 }
 0x13c   :  { %v223_v37 = vpop.f32.mrf.mxu2 }
 0x13d   :  { %v224_v38 = vadd.f32 %v864_v7, %v223_v37 }
 0x13e   :  { %v245_v11 = vld [vmem:[#allocation2] sm:$0x3]  ;;  %v308_v40 = vld [vmem:[#allocation2 + $0x2] sm:$0x3] }
 0x13f   :  { %234 = vst [vmem:[#allocation2 + $0x8] sm:$0xf] %v224_v38   ;;  %v372_v2 = vld [vmem:[#allocation2 + $0x4] sm:$0x3] }
 0x140   :  { %238 = vst [vmem:[#allocation2 + $0x8] sm:$0xf0] %v224_v38  }
 0x1b4   :  { %v1020_v10 = vpop.f32.mrf.mxu3 }
 0x1bc   :  { %v267_v12 = vpop.f32.mrf.mxu3 }
 0x1bd   :  { %v270_v13 = vadd.f32 %v267_v12, %v245_v11 }
 0x1bf   :  { %873 = vtanh.f32 %v270_v13  ;;  %v836_v15 = vmul.f32 -1.442695, %v270_v13 }
 0x1c1   :  { %875 = vpow2.f32 %v836_v15 }
 0x1c5   :  { %v874_v14 = vpop.eup %873 }
 0x1c6   :  { %293 = vrot.lane.b32.xlu0 %v874_v14, %s967_s8 }
 0x1c7   :  { %v876_v16 = vpop.eup %875 }
 0x1c8   :  { %v274_v17 = vadd.f32 1.0, %v876_v16 }
 0x1ca   :  { %877 = vrcp.f32 %v274_v17  ;;  %v286_v23 = vand.u32 2147483648, %v274_v17  ;;  %vm280_vm4 = vweird.f32 %v274_v17  ;;  %v284_v24 = vand.u32 2147483647, %v274_v17 }
 0x1cc   :  { %v287_v26 = vor.u32 1.1754944e-38, %v286_v23  ;;  %vm285_vm6 = vcmp.eq.f32.partialorder %v284_v24, 8.507059e+37 }
 0x1d0   :  { %v878_v18 = vpop.eup %877 }
 0x1d1   :  { %v276_v19 = vmul.f32 %v878_v18, %v274_v17  ;;  %vm281_vm3 = vweird.f32 %v878_v18 }
 0x1d2   :  { %vm282_vm5 = vmor %vm280_vm4, %vm281_vm3 }
 0x1d3   :  { %v277_v20 = vsub.f32 1.0, %v276_v19 }
 0x1d5   :  { %v278_v21 = vmul.f32 %v878_v18, %v277_v20 }
 0x1d7   :  { %v279_v22 = vadd.f32 %v878_v18, %v278_v21 }
 0x1d9   :  { %v283_v25 = vsel %vm282_vm5, %v878_v18, %v279_v22 }
 0x1da   :  { %v288_v28 = vsel %vm285_vm6, %v287_v26, %v283_v25 }
 0x1db   :  { %v291_v30 = vmul.f32 0.0, %v288_v28 }
 0x238   :  { %v294_v27 = vpop.permute.xlu0 %293 }
 0x239   :  { %v296_v29 = vmul.f32 %v294_v27, %v288_v28 }
 0x23b   :  { %298 = vrot.lane.b32.xlu0 %v296_v29, %s967_s8  ;;  %v436_v29 = vld [vmem:[#allocation2 + $0x6] sm:$0x3] }
 0x2ad   :  { %v299_v31 = vpop.permute.xlu0 %298 }
 0x2ae   :  { %v301_v32 = vadd.f32 %v299_v31, %v291_v30 }
 0x2b0   :  { %879 = vtanh.f32 %v301_v32 }
 0x2b6   :  { %v880_v33 = vpop.eup %879 }
 0x2b7   :  { %304 = vrot.lane.b32.xlu1 %v880_v33, %s967_s8 }
 0x329   :  { %v305_v35 = vpop.permute.xlu1 %304 }
 0x32a   :  { %v307_v36 = vmul.f32 %v305_v35, %v288_v28 }
 0x32c   :  { %310 = vrot.lane.b32.xlu1 %v307_v36, %s968_s11 }
 0x39e   :  { %v311_v39 = vpop.permute.xlu1 %310 }
 0x39f   :  { %837 = vmatmul.msk.f32.vlgmr.msra.gmra.mxu2 %vm246_vm7, %v311_v39 }
 0x422   :  { %v331_v41 = vpop.f32.mrf.mxu2 }
 0x423   :  { %v334_v42 = vadd.f32 %v331_v41, %v308_v40 }
 0x425   :  { %881 = vtanh.f32 %v334_v42  ;;  %v838_v44 = vmul.f32 -1.442695, %v334_v42 }
 0x427   :  { %883 = vpow2.f32 %v838_v44 }
 0x42b   :  { %v882_v43 = vpop.eup %881 }
 0x42c   :  { %357 = vrot.lane.b32.xlu2 %v882_v43, %s967_s8 }
 0x42d   :  { %v884_v45 = vpop.eup %883 }
 0x42e   :  { %v338_v46 = vadd.f32 1.0, %v884_v45 }
 0x430   :  { %885 = vrcp.f32 %v338_v46  ;;  %v350_v52 = vand.u32 2147483648, %v338_v46  ;;  %vm344_vm9 = vweird.f32 %v338_v46  ;;  %v348_v53 = vand.u32 2147483647, %v338_v46 }
 0x432   :  { %v351_v55 = vor.u32 1.1754944e-38, %v350_v52  ;;  %vm349_vm11 = vcmp.eq.f32.partialorder %v348_v53, 8.507059e+37 }
 0x436   :  { %v886_v47 = vpop.eup %885 }
 0x437   :  { %v340_v48 = vmul.f32 %v886_v47, %v338_v46  ;;  %vm345_vm8 = vweird.f32 %v886_v47 }
 0x438   :  { %vm346_vm10 = vmor %vm344_vm9, %vm345_vm8 }
 0x439   :  { %v341_v49 = vsub.f32 1.0, %v340_v48 }
 0x43b   :  { %v342_v50 = vmul.f32 %v886_v47, %v341_v49 }
 0x43d   :  { %v343_v51 = vadd.f32 %v886_v47, %v342_v50 }
 0x43f   :  { %v347_v54 = vsel %vm346_vm10, %v886_v47, %v343_v51 }
 0x440   :  { %v352_v57 = vsel %vm349_vm11, %v351_v55, %v347_v54  ;;  %v500_v55 = vld [vmem:[#allocation2 + $0x8] sm:$0x3] }
 0x441   :  { %v355_v59 = vmul.f32 %v352_v57, %v301_v32 }
 0x486   :  { %v358_v56 = vpop.permute.xlu2 %357 }
 0x487   :  { %v360_v58 = vmul.f32 %v358_v56, %v352_v57 }
 0x489   :  { %362 = vrot.lane.b32.xlu2 %v360_v58, %s967_s8 }
 0x4e3   :  { %v363_v60 = vpop.permute.xlu2 %362 }
 0x4e4   :  { %v365_v61 = vadd.f32 %v363_v60, %v355_v59 }
 0x4e6   :  { %887 = vtanh.f32 %v365_v61 }
 0x4ec   :  { %v888_v62 = vpop.eup %887 }
 0x4ed   :  { %368 = vrot.lane.b32.xlu0 %v888_v62, %s967_s8 }
 0x55f   :  { %v369_v63 = vpop.permute.xlu0 %368 }
 0x560   :  { %v371_v0 = vmul.f32 %v369_v63, %v352_v57 }
 0x562   :  { %374 = vrot.lane.b32.xlu1 %v371_v0, %s968_s11 }
 0x5d4   :  { %v375_v1 = vpop.permute.xlu1 %374 }
 0x5d5   :  { %839 = vmatmul.msk.f32.vlgmr.msrb.gmra.mxu0 %vm246_vm7, %v375_v1 }
 0x652   :  { %v395_v3 = vpop.f32.mrf.mxu0 }
 0x653   :  { %v398_v4 = vadd.f32 %v395_v3, %v372_v2 }
 0x655   :  { %889 = vtanh.f32 %v398_v4  ;;  %v840_v6 = vmul.f32 -1.442695, %v398_v4 }
 0x657   :  { %891 = vpow2.f32 %v840_v6 }
 0x65b   :  { %v890_v5 = vpop.eup %889 }
 0x65c   :  { %421 = vrot.lane.b32.xlu2 %v890_v5, %s967_s8 }
 0x65d   :  { %v892_v7 = vpop.eup %891 }
 0x65e   :  { %v402_v8 = vadd.f32 1.0, %v892_v7 }
 0x660   :  { %893 = vrcp.f32 %v402_v8  ;;  %v414_v15 = vand.u32 2147483648, %v402_v8  ;;  %vm408_vm13 = vweird.f32 %v402_v8  ;;  %v412_v16 = vand.u32 2147483647, %v402_v8 }
 0x662   :  { %v415_v18 = vor.u32 1.1754944e-38, %v414_v15  ;;  %vm413_vm15 = vcmp.eq.f32.partialorder %v412_v16, 8.507059e+37 }
 0x666   :  { %v894_v9 = vpop.eup %893 }
 0x667   :  { %v404_v11 = vmul.f32 %v894_v9, %v402_v8  ;;  %vm409_vm12 = vweird.f32 %v894_v9 }
 0x668   :  { %vm410_vm14 = vmor %vm408_vm13, %vm409_vm12 }
 0x669   :  { %v405_v12 = vsub.f32 1.0, %v404_v11 }
 0x66b   :  { %v406_v13 = vmul.f32 %v894_v9, %v405_v12 }
 0x66d   :  { %v407_v14 = vadd.f32 %v894_v9, %v406_v13 }
 0x66f   :  { %v411_v17 = vsel %vm410_vm14, %v894_v9, %v407_v14 }
 0x670   :  { %v416_v20 = vsel %vm413_vm15, %v415_v18, %v411_v17  ;;  %v564_v18 = vld [vmem:[#allocation2 + $0xa] sm:$0x3] }
 0x671   :  { %v419_v22 = vmul.f32 %v416_v20, %v365_v61 }
 0x6b6   :  { %v422_v19 = vpop.permute.xlu2 %421 }
 0x6b7   :  { %v424_v21 = vmul.f32 %v422_v19, %v416_v20 }
 0x6b9   :  { %426 = vrot.lane.b32.xlu0 %v424_v21, %s967_s8 }
 0x72b   :  { %v427_v23 = vpop.permute.xlu0 %426 }
 0x72c   :  { %v429_v24 = vadd.f32 %v427_v23, %v419_v22 }
 0x72e   :  { %895 = vtanh.f32 %v429_v24 }
 0x734   :  { %v896_v25 = vpop.eup %895 }
 0x735   :  { %432 = vrot.lane.b32.xlu1 %v896_v25, %s967_s8 }
 0x7a7   :  { %v433_v26 = vpop.permute.xlu1 %432 }
 0x7a8   :  { %v435_v27 = vmul.f32 %v433_v26, %v416_v20 }
 0x7aa   :  { %438 = vrot.lane.b32.xlu2 %v435_v27, %s968_s11 }
 0x804   :  { %v439_v28 = vpop.permute.xlu2 %438 }
 0x805   :  { %841 = vmatmul.msk.f32.vlgmr.msrb.gmra.mxu1 %vm246_vm7, %v439_v28 }
 0x882   :  { %v459_v30 = vpop.f32.mrf.mxu1 }
 0x883   :  { %v462_v31 = vadd.f32 %v459_v30, %v436_v29 }
 0x885   :  { %897 = vtanh.f32 %v462_v31  ;;  %v842_v33 = vmul.f32 -1.442695, %v462_v31 }
 0x887   :  { %899 = vpow2.f32 %v842_v33 }
 0x88b   :  { %v898_v32 = vpop.eup %897 }
 0x88c   :  { %485 = vrot.lane.b32.xlu0 %v898_v32, %s967_s8 }
 0x88d   :  { %v900_v34 = vpop.eup %899 }
 0x88e   :  { %v466_v35 = vadd.f32 1.0, %v900_v34 }
 0x890   :  { %901 = vrcp.f32 %v466_v35  ;;  %v478_v41 = vand.u32 2147483648, %v466_v35  ;;  %vm472_vm1 = vweird.f32 %v466_v35  ;;  %v476_v42 = vand.u32 2147483647, %v466_v35 }
 0x892   :  { %v479_v44 = vor.u32 1.1754944e-38, %v478_v41  ;;  %vm477_vm3 = vcmp.eq.f32.partialorder %v476_v42, 8.507059e+37 }
 0x896   :  { %v902_v36 = vpop.eup %901 }
 0x897   :  { %v468_v37 = vmul.f32 %v902_v36, %v466_v35  ;;  %vm473_vm0 = vweird.f32 %v902_v36 }
 0x898   :  { %vm474_vm2 = vmor %vm472_vm1, %vm473_vm0 }
 0x899   :  { %v469_v38 = vsub.f32 1.0, %v468_v37 }
 0x89b   :  { %v470_v39 = vmul.f32 %v902_v36, %v469_v38 }
 0x89d   :  { %v471_v40 = vadd.f32 %v902_v36, %v470_v39 }
 0x89f   :  { %v475_v43 = vsel %vm474_vm2, %v902_v36, %v471_v40 }
 0x8a0   :  { %v480_v46 = vsel %vm477_vm3, %v479_v44, %v475_v43  ;;  %v628_v44 = vld [vmem:[#allocation2 + $0xc] sm:$0x3] }
 0x8a1   :  { %v483_v48 = vmul.f32 %v480_v46, %v429_v24 }
 0x8fe   :  { %v486_v45 = vpop.permute.xlu0 %485 }
 0x8ff   :  { %v488_v47 = vmul.f32 %v486_v45, %v480_v46 }
 0x901   :  { %490 = vrot.lane.b32.xlu1 %v488_v47, %s967_s8 }
 0x973   :  { %v491_v49 = vpop.permute.xlu1 %490 }
 0x974   :  { %v493_v50 = vadd.f32 %v491_v49, %v483_v48 }
 0x976   :  { %903 = vtanh.f32 %v493_v50 }
 0x97c   :  { %v904_v51 = vpop.eup %903 }
 0x97d   :  { %496 = vrot.lane.b32.xlu2 %v904_v51, %s967_s8 }
 0x9d7   :  { %v497_v52 = vpop.permute.xlu2 %496 }
 0x9d8   :  { %v499_v53 = vmul.f32 %v497_v52, %v480_v46 }
 0x9da   :  { %502 = vrot.lane.b32.xlu0 %v499_v53, %s968_s11 }
 0xa4c   :  { %v503_v54 = vpop.permute.xlu0 %502 }
 0xa4d   :  { %843 = vmatmul.msk.f32.vlgmr.msra.gmra.mxu3 %vm246_vm7, %v503_v54 }
 0xad0   :  { %v523_v56 = vpop.f32.mrf.mxu3 }
 0xad1   :  { %v526_v57 = vadd.f32 %v523_v56, %v500_v55 }
 0xad3   :  { %905 = vtanh.f32 %v526_v57  ;;  %v844_v59 = vmul.f32 -1.442695, %v526_v57 }
 0xad5   :  { %907 = vpow2.f32 %v844_v59 }
 0xad9   :  { %v906_v58 = vpop.eup %905 }
 0xada   :  { %549 = vrot.lane.b32.xlu1 %v906_v58, %s967_s8 }
 0xadb   :  { %v908_v60 = vpop.eup %907 }
 0xadc   :  { %v530_v61 = vadd.f32 1.0, %v908_v60 }
 0xade   :  { %909 = vrcp.f32 %v530_v61  ;;  %v542_v3 = vand.u32 2147483648, %v530_v61  ;;  %vm536_vm5 = vweird.f32 %v530_v61  ;;  %v540_v4 = vand.u32 2147483647, %v530_v61 }
 0xae0   :  { %v543_v6 = vor.u32 1.1754944e-38, %v542_v3  ;;  %vm541_vm8 = vcmp.eq.f32.partialorder %v540_v4, 8.507059e+37 }
 0xae4   :  { %v910_v62 = vpop.eup %909 }
 0xae5   :  { %v532_v63 = vmul.f32 %v910_v62, %v530_v61  ;;  %vm537_vm4 = vweird.f32 %v910_v62 }
 0xae6   :  { %vm538_vm6 = vmor %vm536_vm5, %vm537_vm4  ;;  %vm825_vm5 = vcmask 1024  }
 0xae7   :  { %v533_v0 = vsub.f32 1.0, %v532_v63 }
 0xae9   :  { %v534_v1 = vmul.f32 %v910_v62, %v533_v0 }
 0xaeb   :  { %v535_v2 = vadd.f32 %v910_v62, %v534_v1 }
 0xaed   :  { %v539_v5 = vsel %vm538_vm6, %v910_v62, %v535_v2 }
 0xaee   :  { %v544_v8 = vsel %vm541_vm8, %v543_v6, %v539_v5  ;;  %v692_v6 = vld [vmem:[#allocation2 + $0xe] sm:$0x3] }
 0xaef   :  { %v547_v11 = vmul.f32 %v544_v8, %v493_v50 }
 0xb4c   :  { %v550_v7 = vpop.permute.xlu1 %549 }
 0xb4d   :  { %v552_v9 = vmul.f32 %v550_v7, %v544_v8 }
 0xb4f   :  { %554 = vrot.lane.b32.xlu2 %v552_v9, %s967_s8 }
 0xba9   :  { %v555_v12 = vpop.permute.xlu2 %554 }
 0xbaa   :  { %v557_v13 = vadd.f32 %v555_v12, %v547_v11 }
 0xbac   :  { %911 = vtanh.f32 %v557_v13 }
 0xbb2   :  { %v912_v14 = vpop.eup %911 }
 0xbb3   :  { %560 = vrot.lane.b32.xlu0 %v912_v14, %s967_s8 }
 0xc25   :  { %v561_v15 = vpop.permute.xlu0 %560 }
 0xc26   :  { %v563_v16 = vmul.f32 %v561_v15, %v544_v8 }
 0xc28   :  { %566 = vrot.lane.b32.xlu1 %v563_v16, %s968_s11 }
 0xc9a   :  { %v567_v17 = vpop.permute.xlu1 %566 }
 0xc9b   :  { %845 = vmatmul.msk.f32.vlgmr.msrb.gmra.mxu2 %vm246_vm7, %v567_v17 }
 0xd1e   :  { %v587_v19 = vpop.f32.mrf.mxu2 }
 0xd1f   :  { %v590_v20 = vadd.f32 %v587_v19, %v564_v18 }
 0xd21   :  { %913 = vtanh.f32 %v590_v20  ;;  %v846_v22 = vmul.f32 -1.442695, %v590_v20 }
 0xd23   :  { %915 = vpow2.f32 %v846_v22 }
 0xd27   :  { %v914_v21 = vpop.eup %913 }
 0xd28   :  { %613 = vrot.lane.b32.xlu2 %v914_v21, %s967_s8 }
 0xd29   :  { %v916_v23 = vpop.eup %915 }
 0xd2a   :  { %v594_v24 = vadd.f32 1.0, %v916_v23 }
 0xd2c   :  { %917 = vrcp.f32 %v594_v24  ;;  %v606_v30 = vand.u32 2147483648, %v594_v24  ;;  %vm600_vm10 = vweird.f32 %v594_v24  ;;  %v604_v31 = vand.u32 2147483647, %v594_v24 }
 0xd2e   :  { %v607_v33 = vor.u32 1.1754944e-38, %v606_v30  ;;  %vm605_vm12 = vcmp.eq.f32.partialorder %v604_v31, 8.507059e+37  ;;  %v759_v30 = vld [vmem:[#allocation3 + $0x1d8] sm:$0xff]  ;;  %v758_v31 = vld [vmem:[#allocation3 + $0x1d0] sm:$0xff] }
 0xd2f   :  { %779 = vmatpush.msrb.mxu3 %v759_v30 }
 0xd31   :  { %780 = vmatpush.msrb.mxu3 %v758_v31 }
 0xd32   :  { %v918_v25 = vpop.eup %917 }
 0xd33   :  { %v596_v26 = vmul.f32 %v918_v25, %v594_v24  ;;  %vm601_vm9 = vweird.f32 %v918_v25 }
 0xd34   :  { %vm602_vm11 = vmor %vm600_vm10, %vm601_vm9 }
 0xd35   :  { %v597_v27 = vsub.f32 1.0, %v596_v26 }
 0xd37   :  { %v598_v28 = vmul.f32 %v918_v25, %v597_v27 }
 0xd39   :  { %v599_v29 = vadd.f32 %v918_v25, %v598_v28 }
 0xd3b   :  { %v603_v32 = vsel %vm602_vm11, %v918_v25, %v599_v29 }
 0xd3c   :  { %v608_v35 = vsel %vm605_vm12, %v607_v33, %v603_v32  ;;  %v757_v32 = vld [vmem:[#allocation3 + $0x1c8] sm:$0xff]  ;;  %v756_v33 = vld [vmem:[#allocation3 + $0x1c0] sm:$0xff] }
 0xd3d   :  { %v611_v37 = vmul.f32 %v608_v35, %v557_v13  ;;  %781 = vmatpush.msrb.mxu3 %v757_v32 }
 0xd3f   :  { %782 = vmatpush.msrb.mxu3 %v756_v33 }
 0xd82   :  { %v614_v34 = vpop.permute.xlu2 %613 }
 0xd83   :  { %v616_v36 = vmul.f32 %v614_v34, %v608_v35 }
 0xd85   :  { %618 = vrot.lane.b32.xlu0 %v616_v36, %s967_s8  ;;  %v788_v36 = vld [vmem:[%s1099_s2] sm:$0x3] }
 0xdf7   :  { %v619_v38 = vpop.permute.xlu0 %618 }
 0xdf8   :  { %v621_v39 = vadd.f32 %v619_v38, %v611_v37  ;;  %v969_v37 = vmov 1   ;;  %v970_v38 = vmov 0  }
 0xdf9   :  { %861 = vset.pattern.permute.xlu0 %v969_v37  ;;  %860 = vset.pattern.permute.xlu2 %v970_v38 }
 0xdfa   :  { %919 = vtanh.f32 %v621_v39 }
 0xe00   :  { %v920_v40 = vpop.eup %919 }
 0xe01   :  { %624 = vrot.lane.b32.xlu1 %v920_v40, %s967_s8  ;;  %v866_v40 = vld [vmem:[%s1101_s4 + $0x5] ss:$0 sm:$0xff] }
 0xe73   :  { %v625_v41 = vpop.permute.xlu1 %624 }
 0xe74   :  { %v627_v42 = vmul.f32 %v625_v41, %v608_v35 }
 0xe76   :  { %630 = vrot.lane.b32.xlu2 %v627_v42, %s968_s11  ;;  %v869_v42 = vld [vmem:[%s1101_s4 + $0x7] ss:$0 sm:$0xff] }
 0xed0   :  { %v631_v43 = vpop.permute.xlu2 %630 }
 0xed1   :  { %847 = vmatmul.msk.f32.vlgmr.msra.gmra.mxu0 %vm246_vm7, %v631_v43 }
 0xf4e   :  { %v651_v45 = vpop.f32.mrf.mxu0 }
 0xf4f   :  { %v654_v46 = vadd.f32 %v651_v45, %v628_v44  ;;  %v865_v44 = vld [vmem:[%s1101_s4 + $0x2] ss:$0 sm:$0xff]  ;;  %v867_v45 = vld [vmem:[%s1101_s4 + $0x6] ss:$0 sm:$0xff] }
 0xf51   :  { %921 = vtanh.f32 %v654_v46  ;;  %v848_v48 = vmul.f32 -1.442695, %v654_v46 }
 0xf53   :  { %923 = vpow2.f32 %v848_v48  ;;  %v870_v48 = vld [vmem:[%s1101_s4 + $0x8] ss:$0 sm:$0xff] }
 0xf57   :  { %v922_v47 = vpop.eup %921 }
 0xf58   :  { %677 = vrot.lane.b32.xlu0 %v922_v47, %s967_s8  ;;  %v868_v47 = vld [vmem:[%s1101_s4 + $0x4] ss:$0 sm:$0xff] }
 0xf59   :  { %v924_v49 = vpop.eup %923 }
 0xf5a   :  { %v658_v50 = vadd.f32 1.0, %v924_v49 }
 0xf5c   :  { %925 = vrcp.f32 %v658_v50  ;;  %v670_v56 = vand.u32 2147483648, %v658_v50  ;;  %vm664_vm14 = vweird.f32 %v658_v50  ;;  %v668_v57 = vand.u32 2147483647, %v658_v50 }
 0xf5e   :  { %v671_v59 = vor.u32 1.1754944e-38, %v670_v56  ;;  %vm669_vm0 = vcmp.eq.f32.partialorder %v668_v57, 8.507059e+37 }
 0xf62   :  { %v926_v51 = vpop.eup %925 }
 0xf63   :  { %v660_v52 = vmul.f32 %v926_v51, %v658_v50  ;;  %vm665_vm13 = vweird.f32 %v926_v51  ;;  %v188_v50 = vadd.f32 %v865_v44, %v1020_v10  ;;  %v872_v10 = vld [vmem:[%s1101_s4 + $0xa] ss:$0 sm:$0xff] }
 0xf64   :  { %vm666_vm15 = vmor %vm664_vm14, %vm665_vm13 }
 0xf65   :  { %v661_v53 = vsub.f32 1.0, %v660_v52 }
 0xf67   :  { %v662_v54 = vmul.f32 %v926_v51, %v661_v53 }
 0xf69   :  { %v663_v55 = vadd.f32 %v926_v51, %v662_v54 }
 0xf6b   :  { %v667_v58 = vsel %vm666_vm15, %v926_v51, %v663_v55  ;;  %v190_v55 = vmax.f32 %v188_v50, 0.0 }
 0xf6c   :  { %v672_v61 = vsel %vm669_vm0, %v671_v59, %v667_v58 }
 0xf6d   :  { %v675_v63 = vmul.f32 %v672_v61, %v621_v39 }
 0xfca   :  { %v678_v60 = vpop.permute.xlu0 %677 }
 0xfcb   :  { %v680_v62 = vmul.f32 %v678_v60, %v672_v61 }
 0xfcd   :  { %682 = vrot.lane.b32.xlu1 %v680_v62, %s967_s8 }
0x103f   :  { %v683_v0 = vpop.permute.xlu1 %682 }
0x1040   :  { %v685_v1 = vadd.f32 %v683_v0, %v675_v63 }
0x1042   :  { %927 = vtanh.f32 %v685_v1 }
0x1048   :  { %v928_v2 = vpop.eup %927 }
0x1049   :  { %688 = vrot.lane.b32.xlu2 %v928_v2, %s967_s8 }
0x10a3   :  { %v689_v3 = vpop.permute.xlu2 %688 }
0x10a4   :  { %v691_v4 = vmul.f32 %v689_v3, %v672_v61  ;;  %v871_v61 = vld [vmem:[%s1101_s4 + $0x9] ss:$0 sm:$0xff] }
0x10a6   :  { %694 = vrot.lane.b32.xlu0 %v691_v4, %s968_s11 }
0x1118   :  { %v695_v5 = vpop.permute.xlu0 %694 }
0x1119   :  { %849 = vmatmul.msk.f32.vlgmr.msra.gmra.mxu1 %vm246_vm7, %v695_v5 }
0x1196   :  { %v715_v7 = vpop.f32.mrf.mxu1 }
0x1197   :  { %v718_v8 = vadd.f32 %v715_v7, %v692_v6 }
0x1199   :  { %929 = vtanh.f32 %v718_v8  ;;  %v850_v11 = vmul.f32 -1.442695, %v718_v8 }
0x119b   :  { %931 = vpow2.f32 %v850_v11 }
0x119f   :  { %v930_v9 = vpop.eup %929 }
0x11a0   :  { %741 = vrot.lane.b32.xlu1 %v930_v9, %s967_s8 }
0x11a1   :  { %v932_v12 = vpop.eup %931 }
0x11a2   :  { %v722_v13 = vadd.f32 1.0, %v932_v12 }
0x11a4   :  { %933 = vrcp.f32 %v722_v13  ;;  %v734_v19 = vand.u32 2147483648, %v722_v13  ;;  %vm728_vm2 = vweird.f32 %v722_v13  ;;  %v732_v20 = vand.u32 2147483647, %v722_v13 }
0x11a6   :  { %v735_v22 = vor.u32 1.1754944e-38, %v734_v19  ;;  %vm733_vm4 = vcmp.eq.f32.partialorder %v732_v20, 8.507059e+37 }
0x11aa   :  { %v934_v14 = vpop.eup %933 }
0x11ab   :  { %v724_v15 = vmul.f32 %v934_v14, %v722_v13  ;;  %vm729_vm1 = vweird.f32 %v934_v14 }
0x11ac   :  { %vm730_vm3 = vmor %vm728_vm2, %vm729_vm1 }
0x11ad   :  { %v725_v16 = vsub.f32 1.0, %v724_v15 }
0x11af   :  { %v726_v17 = vmul.f32 %v934_v14, %v725_v16 }
0x11b1   :  { %v727_v18 = vadd.f32 %v934_v14, %v726_v17 }
0x11b3   :  { %v731_v21 = vsel %vm730_vm3, %v934_v14, %v727_v18 }
0x11b4   :  { %v736_v24 = vsel %vm733_vm4, %v735_v22, %v731_v21 }
0x11b5   :  { %v739_v26 = vmul.f32 %v736_v24, %v685_v1 }
0x1212   :  { %v742_v23 = vpop.permute.xlu1 %741 }
0x1213   :  { %v744_v25 = vmul.f32 %v742_v23, %v736_v24 }
0x1215   :  { %746 = vrot.lane.b32.xlu2 %v744_v25, %s967_s8 }
0x121d   :  { %792 = vperm.xlu2 %860, %v788_v36  }
0x126f   :  { %v747_v27 = vpop.permute.xlu2 %746 }
0x1270   :  { %v749_v28 = vadd.f32 %v747_v27, %v739_v26 }
0x1272   :  { %935 = vtanh.f32 %v749_v28 }
0x1277   :  { %v793_v41 = vpop.permute.xlu2 %792 }
0x1278   :  { %v936_v29 = vpop.eup %935  ;;  %v796_v46 = vmul.f32 %v866_v40, %v793_v41 }
0x1279   :  { %752 = vrot.lane.b32.xlu0 %v936_v29, %s967_s8 }
0x127a   :  { %v799_v51 = vadd.f32 %v867_v45, %v796_v46 }
0x127c   :  { %v800_v56 = vmax.f32 %v799_v51, 0.0 }
0x1281   :  { %803 = vperm.xlu0 %861, %v788_v36  }
0x12eb   :  { %v753_v34 = vpop.permute.xlu0 %752 }
0x12ec   :  { %v755_v35 = vmul.f32 %v753_v34, %v736_v24 }
0x12ee   :  { %763 = vrot.lane.b32.xlu1 %v755_v35, %s968_s11 }
0x12f3   :  { %v804_v43 = vpop.permute.xlu0 %803 }
0x12f4   :  { %v807_v49 = vmul.f32 %v869_v42, %v804_v43 }
0x12f6   :  { %v810_v54 = vadd.f32 %v870_v48, %v807_v49 }
0x12f8   :  { %v811_v59 = vmax.f32 %v810_v54, 0.0 }
0x1360   :  { %v764_v39 = vpop.permute.xlu1 %763 }
0x1361   :  { %851 = vmatmul.msk.f32.vlgmr.msrb.gmra.mxu3 %vm246_vm7, %v764_v39  ;;  %vm818_vm7 = vcmask 254976  }
0x13e4   :  { %v784_v52 = vpop.f32.mrf.mxu3 }
0x13e5   :  { %v785_v53 = vadd.f32 %v868_v47, %v784_v52 }
0x13e7   :  { %v787_v57 = vmax.f32 %v785_v53, 0.0 }
0x13e9   :  { %v812_v58 = vadd.f32 %v787_v57, %v190_v55 }
0x13eb   :  { %v813_v60 = vadd.f32 %v812_v58, %v800_v56 }
0x13ed   :  { %v814_v62 = vadd.f32 %v813_v60, %v811_v59 }
0x13ef   :  { %v817_v63 = vmul.f32 %v871_v61, %v814_v62 }
0x13f1   :  { %v819_v0 = vsel %vm818_vm7, %v817_v63, 0.0 }
0x13f2   :  { %820 = vadd.xlane.f32.xlu1 %v819_v0 }
0x1465   :  { %v821_v1 = vpop.xlane.xlu1 %820 }
0x1466   :  { %v824_v2 = vadd.f32 %v872_v10, %v821_v1 }
0x1468   :  { %826 = vst.msk [vmem:[%s1102_s5] sm:$0x3] %vm825_vm5, %v824_v2 }
0x1469   :  { %831 = vsyncpa [#allocation4], 1 }

</bundles_post_ra>
